<compile_context>
chip_gen: v6e
topology: v6e:2x2x1
jax: 0.10.0
libtpu: 0.0.40
codegen_flags: <defaults>
</compile_context>

<pallas_src>
import functools

import jax
import jax.numpy as jnp
from jax.experimental import pallas as pl
from jax.experimental.pallas import tpu as pltpu

LANE = 128


def _rup(n, m=LANE):
    return ((n + m - 1) // m) * m


def _pick_tile(n, candidates=(512, 256, 128)):
    for c in candidates:
        if c <= n and n % c == 0:
            return c
    return n


# ------------------------------ Pallas kernels ------------------------------

def _tcn_stack_kernel(*refs, blocks_cfg, S, k):
    """Whole TemporalConvNet stack for one batch row, fully fused in VMEM.

    blocks_cfg: tuple of (dilation, cin, cout, has_down) per TemporalBlock
    (all channel counts already padded to 128 multiples).
    refs layout: x, [w1,b1,w2,b2,(wd,bd)]*, out, [xpad,hpad]* (scratch).
    """
    n_w = sum(4 + (2 if hd else 0) for (_, _, _, hd) in blocks_cfg)
    x_ref = refs[0]
    w_refs = refs[1:1 + n_w]
    o_ref = refs[1 + n_w]
    scratch = refs[2 + n_w:]

    def dilated_causal_conv(pad_ref, act_f32, w_ref, b_ref, d, cin, cout):
        # Causal left-pad via VMEM scratch, then k accumulating MXU dots with
        # bf16 inputs and f32 accumulation.  The pad rows are rewritten every
        # step (negligible: pad x C zeros) because with "parallel" batch
        # semantics a pl.when(program_id==0) hoist would never run on the
        # second TensorCore of a multi-core chip.
        pad = (k - 1) * d
        pad_ref[0:pad, :] = jnp.zeros((pad, cin), jnp.float32)
        pad_ref[pad:pad + S, :] = act_f32
        acc = None
        for j in range(k):
            lhs = pad_ref[j * d:j * d + S, :].astype(jnp.bfloat16)
            rhs = w_ref[j * cin:(j + 1) * cin, :]              # bf16 slice
            part = jnp.dot(lhs, rhs, preferred_element_type=jnp.float32)
            acc = part if acc is None else acc + part
        return acc + b_ref[...]                                # f32 (S, cout)

    x = x_ref[...]                                             # bf16 (S, C0)
    wi = 0
    si = 0
    for (d, cin, cout, has_down) in blocks_cfg:
        w1, b1, w2, b2 = w_refs[wi:wi + 4]
        wi += 4
        if has_down:
            wd, bd = w_refs[wi:wi + 2]
            wi += 2
        xpad, hpad = scratch[si:si + 2]
        si += 2

        x_f32 = x.astype(jnp.float32)
        h = jnp.maximum(
            dilated_causal_conv(xpad, x_f32, w1, b1, d, cin, cout), 0.0)
        h2 = jnp.maximum(
            dilated_causal_conv(hpad, h, w2, b2, d, cout, cout), 0.0)

        if has_down:      # 1x1 conv on the residual path (x still in VMEM)
            res = jnp.dot(x, wd[...],
                          preferred_element_type=jnp.float32) + bd[...]
        else:             # identity residual
            res = x_f32
        x = jnp.maximum(h2 + res, 0.0).astype(x_ref.dtype)     # bf16 for next

    o_ref[...] = x


def _decoder_kernel(x_ref, w_ref, b_ref, o_ref):
    acc = jnp.dot(x_ref[...], w_ref[...], preferred_element_type=jnp.float32)
    o_ref[...] = (acc + b_ref[...]).astype(o_ref.dtype)


# ------------------------------- wrappers -----------------------------------

def tcn_stack(x, blocks, ksize):
    """All TemporalBlocks fused into one pallas_call.  x: (B, S, C0) bf16 with
    channel dims zero-padded to multiples of 128."""
    B, S, C0 = x.shape

    args = [x]
    in_specs = [pl.BlockSpec((None, S, C0), lambda b: (b, 0, 0))]
    scratch = []
    cfg = []
    cin = C0
    for i, blk in enumerate(blocks):
        cout = blk['b1'].shape[-1]
        d = 2 ** i
        pad = (ksize - 1) * d
        has_down = 'wd' in blk
        args += [blk['w1'], blk['b1'], blk['w2'], blk['b2']]
        # NOTE: weight/bias index maps are constant across the grid; their
        # default double-buffers could be halved with pipeline_mode=
        # pl.Buffered(1) to reclaim VMEM on v7x (64 MiB/TC).
        in_specs += [
            pl.BlockSpec((ksize * cin, cout), lambda b: (0, 0)),
            pl.BlockSpec((1, cout), lambda b: (0, 0)),
            pl.BlockSpec((ksize * cout, cout), lambda b: (0, 0)),
            pl.BlockSpec((1, cout), lambda b: (0, 0)),
        ]
        if has_down:
            args += [blk['wd'], blk['bd']]
            in_specs += [pl.BlockSpec((cin, cout), lambda b: (0, 0)),
                         pl.BlockSpec((1, cout), lambda b: (0, 0))]
        scratch += [pltpu.VMEM((pad + S, cin), jnp.float32),
                    pltpu.VMEM((pad + S, cout), jnp.float32)]
        cfg.append((d, cin, cout, has_down))
        cin = cout

    kern = functools.partial(_tcn_stack_kernel, blocks_cfg=tuple(cfg),
                             S=S, k=ksize)
    # TODO(synk): for small S, fold several batch rows (or >=256-row S-tiles
    # with a (k-1)*d halo) into the M dimension of each conv dot; with one
    # batch row per grid step the MXU M dimension is only S.
    return pl.pallas_call(
        kern,
        out_shape=jax.ShapeDtypeStruct((B, S, cin), x.dtype),
        grid=(B,),
        in_specs=in_specs,
        out_specs=pl.BlockSpec((None, S, cin), lambda b: (b, 0, 0)),
        scratch_shapes=scratch,
        compiler_params=pltpu.CompilerParams(
            dimension_semantics=("parallel",),
            vmem_limit_bytes=48 * 1024 * 1024),
    )(*args)


def decoder_linear(x, w, b):
    """Decoder nn.Linear: (B, S, C) bf16 -> (B, S, Vp) f32 logits.

    Batch is folded into the MXU M dimension; the grid is ordered
    (vocab tiles outer, M tiles inner) so the (C, Vp) weight is streamed
    from HBM exactly once while the small activation tile is re-read per
    vocab tile.
    """
    B, S, C = x.shape
    Vp = w.shape[1]
    M = B * S
    tm = 256
    Mp = _rup(M, tm)
    tn = _pick_tile(Vp)
    x2 = x.reshape(M, C)
    if Mp != M:
        x2 = jnp.pad(x2, ((0, Mp - M), (0, 0)))
    out = pl.pallas_call(
        _decoder_kernel,
        out_shape=jax.ShapeDtypeStruct((Mp, Vp), jnp.float32),
        grid=(Vp // tn, Mp // tm),
        in_specs=[pl.BlockSpec((tm, C), lambda j, i: (i, 0)),
                  pl.BlockSpec((C, tn), lambda j, i: (0, j)),
                  pl.BlockSpec((1, tn), lambda j, i: (0, j))],
        out_specs=pl.BlockSpec((tm, tn), lambda j, i: (i, j)),
        compiler_params=pltpu.CompilerParams(
            dimension_semantics=("parallel", "parallel"),
            vmem_limit_bytes=48 * 1024 * 1024),
    )(x2, w, b)
    if Mp != M:
        out = out[:M]
    return out.reshape(B, S, Vp)


def mytcn_forward(padded_params, tokens, *, ksize):
    # encoder (nn.Embedding): a gather, kept as plain-JAX glue.
    x = jnp.take(padded_params['emb'], tokens, axis=0)        # (B, S, Ep) bf16
    # self.drop(emb): eval-mode dropout == identity.
    x = tcn_stack(x, padded_params['blocks'], ksize)          # fused TCN stack
    # Logits come back with vocab padded to a 128 multiple (extra columns are
    # exact zeros); slicing to the raw vocab here would force one more full
    # HBM pass over the logits, so it is left to the consumer.
    return decoder_linear(x, padded_params['dec_w'], padded_params['dec_b'])


# ------------------------- parameters / padding ------------------------------

def init_params(key, vocab, emsize, channels, ksize):
    keys = iter(jax.random.split(key, 64))
    p = {'emb': jax.random.normal(next(keys), (vocab, emsize), jnp.float32) * 0.1}
    blocks = []
    cin = emsize
    for cout in channels:
        blk = {
            'w1': jax.random.normal(next(keys), (ksize, cin, cout), jnp.float32) * 0.1,
            'b1': jax.random.normal(next(keys), (cout,), jnp.float32) * 0.01,
            'w2': jax.random.normal(next(keys), (ksize, cout, cout), jnp.float32) * 0.1,
            'b2': jax.random.normal(next(keys), (cout,), jnp.float32) * 0.01,
        }
        if cin != cout:  # 1x1 downsample conv on the residual path
            blk['wd'] = jax.random.normal(next(keys), (cin, cout), jnp.float32) * 0.1
            blk['bd'] = jax.random.normal(next(keys), (cout,), jnp.float32) * 0.01
        blocks.append(blk)
        cin = cout
    p['blocks'] = blocks
    p['dec_w'] = jax.random.normal(next(keys), (cin, vocab), jnp.float32) * 0.1
    p['dec_b'] = jax.random.normal(next(keys), (vocab,), jnp.float32) * 0.01
    return p


def pad_params(p, ksize):
    """Zero-pad channel/vocab dims to multiples of 128 (lane-dense), pre-cast
    matmul weights to bf16 (MXU inputs), keep biases in f32, and pre-reshape
    conv weights to im2col layout (k*Cin_p, Cout_p)."""
    vocab, emsize = p['emb'].shape
    Ep = _rup(emsize)
    out = {'emb': jnp.pad(p['emb'], ((0, 0), (0, Ep - emsize))).astype(jnp.bfloat16)}
    cin, Cp_in = emsize, Ep
    blocks = []
    for blk in p['blocks']:
        cout = blk['b1'].shape[0]
        Cp_out = _rup(cout)
        w1 = jnp.pad(blk['w1'], ((0, 0), (0, Cp_in - cin), (0, Cp_out - cout)))
        w2 = jnp.pad(blk['w2'], ((0, 0), (0, Cp_out - cout), (0, Cp_out - cout)))
        nb = {
            'w1': w1.reshape(ksize * Cp_in, Cp_out).astype(jnp.bfloat16),
            'b1': jnp.pad(blk['b1'], (0, Cp_out - cout)).reshape(1, Cp_out),
            'w2': w2.reshape(ksize * Cp_out, Cp_out).astype(jnp.bfloat16),
            'b2': jnp.pad(blk['b2'], (0, Cp_out - cout)).reshape(1, Cp_out),
        }
        if 'wd' in blk:
            nb['wd'] = jnp.pad(blk['wd'], ((0, Cp_in - cin),
                                           (0, Cp_out - cout))).astype(jnp.bfloat16)
            nb['bd'] = jnp.pad(blk['bd'], (0, Cp_out - cout)).reshape(1, Cp_out)
        blocks.append(nb)
        cin, Cp_in = cout, Cp_out
    out['blocks'] = blocks
    V = p['dec_b'].shape[0]
    Vp = _rup(V)
    out['dec_w'] = jnp.pad(p['dec_w'], ((0, Cp_in - cin),
                                        (0, Vp - V))).astype(jnp.bfloat16)
    out['dec_b'] = jnp.pad(p['dec_b'], (0, Vp - V)).reshape(1, Vp)
    return out


# --------------------------- pure-JAX reference ------------------------------

def ref_forward(params, tokens, ksize):
    x = jnp.take(params['emb'], tokens, axis=0)

    def cconv(x, w, b, d):
        S = x.shape[1]
        pad = (ksize - 1) * d
        xp = jnp.pad(x, ((0, 0), (pad, 0), (0, 0)))
        return sum(jnp.einsum('bsc,cd->bsd', xp[:, j * d: j * d + S, :], w[j])
                   for j in range(ksize)) + b

    for i, blk in enumerate(params['blocks']):
        d = 2 ** i
        out = jax.nn.relu(cconv(x, blk['w1'], blk['b1'], d))
        out = jax.nn.relu(cconv(out, blk['w2'], blk['b2'], d))
        res = (jnp.einsum('bsc,cd->bsd', x, blk['wd']) + blk['bd']) \
            if 'wd' in blk else x
        x = jax.nn.relu(out + res)
    return jnp.einsum('bsc,cd->bsd', x, params['dec_w']) + params['dec_b']


# ----------------------------------- main ------------------------------------

if __name__ == "__main__":
    VOCAB, EMSIZE, CHANNELS, KSIZE = 32, 16, [24, 24], 3   # block0 downsamples,
    B, S = 2, 8                                            # block1 identity-res

    key = jax.random.PRNGKey(0)
    k_param, k_tok = jax.random.split(key)
    params = init_params(k_param, VOCAB, EMSIZE, CHANNELS, KSIZE)
    padded = pad_params(params, KSIZE)
    tokens = jax.random.randint(k_tok, (B, S), 0, VOCAB, dtype=jnp.int32)

    fwd = jax.jit(functools.partial(mytcn_forward, ksize=KSIZE))
    logits = jax.block_until_ready(fwd(padded, tokens))    # (B, S, Vp) padded
    y = logits[:, :, :VOCAB]
    assert y.shape == (B, S, VOCAB), y.shape

    y_ref = jax.block_until_ready(ref_forward(params, tokens, KSIZE))
    err = float(jnp.max(jnp.abs(y.astype(jnp.float32) - y_ref)))
    # bf16 MXU inputs (f32 accumulation) => relaxed tolerance vs f32 reference.
    assert jnp.allclose(y, y_ref, rtol=2e-2, atol=2e-2), err

    print("KERNEL_OK")
</pallas_src>

<mosaic_0001>
module attributes {stable_mosaic.version = 11 : i64} {
  func.func @_tcn_stack_kernel(%arg0: i32, %arg1: memref<1x8x128xbf16, #tpu.memory_space<vmem>>, %arg2: memref<384x128xbf16, #tpu.memory_space<vmem>>, %arg3: memref<1x128xf32, #tpu.memory_space<vmem>>, %arg4: memref<384x128xbf16, #tpu.memory_space<vmem>>, %arg5: memref<1x128xf32, #tpu.memory_space<vmem>>, %arg6: memref<128x128xbf16, #tpu.memory_space<vmem>>, %arg7: memref<1x128xf32, #tpu.memory_space<vmem>>, %arg8: memref<384x128xbf16, #tpu.memory_space<vmem>>, %arg9: memref<1x128xf32, #tpu.memory_space<vmem>>, %arg10: memref<384x128xbf16, #tpu.memory_space<vmem>>, %arg11: memref<1x128xf32, #tpu.memory_space<vmem>>, %arg12: memref<1x8x128xbf16, #tpu.memory_space<vmem>>, %arg13: memref<10x128xf32, #tpu.memory_space<vmem>>, %arg14: memref<10x128xf32, #tpu.memory_space<vmem>>, %arg15: memref<12x128xf32, #tpu.memory_space<vmem>>, %arg16: memref<12x128xf32, #tpu.memory_space<vmem>>) attributes {dimension_semantics = [#tpu.dimension_semantics<parallel>], iteration_bounds = array<i64: 2>, scalar_prefetch = 0 : i64, scratch_operands = 4 : i64, tpu.core_type = #tpu.core_type<tc>, window_params = [{transform_indices = @transform_0, window_bounds = array<i64: 1, 8, 128>}, {pipeline_mode = #tpu.pipeline_mode<synchronous>, transform_indices = @transform_1, window_bounds = array<i64: 384, 128>}, {pipeline_mode = #tpu.pipeline_mode<synchronous>, transform_indices = @transform_2, window_bounds = array<i64: 1, 128>}, {pipeline_mode = #tpu.pipeline_mode<synchronous>, transform_indices = @transform_3, window_bounds = array<i64: 384, 128>}, {pipeline_mode = #tpu.pipeline_mode<synchronous>, transform_indices = @transform_4, window_bounds = array<i64: 1, 128>}, {pipeline_mode = #tpu.pipeline_mode<synchronous>, transform_indices = @transform_5, window_bounds = array<i64: 128, 128>}, {pipeline_mode = #tpu.pipeline_mode<synchronous>, transform_indices = @transform_6, window_bounds = array<i64: 1, 128>}, {pipeline_mode = #tpu.pipeline_mode<synchronous>, transform_indices = @transform_7, window_bounds = array<i64: 384, 128>}, {pipeline_mode = #tpu.pipeline_mode<synchronous>, transform_indices = @transform_8, window_bounds = array<i64: 1, 128>}, {pipeline_mode = #tpu.pipeline_mode<synchronous>, transform_indices = @transform_9, window_bounds = array<i64: 384, 128>}, {pipeline_mode = #tpu.pipeline_mode<synchronous>, transform_indices = @transform_10, window_bounds = array<i64: 1, 128>}, {transform_indices = @transform_11, window_bounds = array<i64: 1, 8, 128>}]} {
    %c0 = arith.constant 0 : index
    %c0_0 = arith.constant 0 : index
    %c0_1 = arith.constant 0 : index
    %0 = vector.load %arg1[%c0, %c0_0, %c0_1] : memref<1x8x128xbf16, #tpu.memory_space<vmem>>, vector<1x8x128xbf16>
    %1 = vector.shape_cast %0 : vector<1x8x128xbf16> to vector<8x128xbf16>
    %2 = arith.extf %1 : vector<8x128xbf16> to vector<8x128xf32>
    %cst = arith.constant 0.000000e+00 : f32
    %3 = vector.broadcast %cst : f32 to vector<2x128xf32>
    %c0_2 = arith.constant 0 : index
    %c0_3 = arith.constant 0 : index
    %4 = vector.load %arg13[%c0_2, %c0_3] : memref<10x128xf32, #tpu.memory_space<vmem>>, vector<2x128xf32>
    tpu.vector_store %arg13[%c0_2, %c0_3], %3 {strides = array<i32>} : memref<10x128xf32, #tpu.memory_space<vmem>>, vector<2x128xf32>,
    %c2 = arith.constant 2 : index
    %c0_4 = arith.constant 0 : index
    %5 = vector.load %arg13[%c2, %c0_4] : memref<10x128xf32, #tpu.memory_space<vmem>>, vector<8x128xf32>
    tpu.vector_store %arg13[%c2, %c0_4], %2 {strides = array<i32>} : memref<10x128xf32, #tpu.memory_space<vmem>>, vector<8x128xf32>,
    %c0_5 = arith.constant 0 : index
    %c0_6 = arith.constant 0 : index
    %6 = vector.load %arg13[%c0_5, %c0_6] : memref<10x128xf32, #tpu.memory_space<vmem>>, vector<8x128xf32>
    %7 = arith.truncf %6 : vector<8x128xf32> to vector<8x128xbf16>
    %c0_7 = arith.constant 0 : index
    %c0_8 = arith.constant 0 : index
    %8 = vector.load %arg2[%c0_7, %c0_8] : memref<384x128xbf16, #tpu.memory_space<vmem>>, vector<128x128xbf16>
    %cst_9 = arith.constant dense<0.000000e+00> : vector<8x128xf32>
    %9 = tpu.matmul %7, %8, %cst_9 {dimension_numbers = #tpu.dot_dimension_numbers<[1], [0], [0], [1], [0, 0, 1, 1], [], []>} : vector<8x128xbf16>, vector<128x128xbf16>, vector<8x128xf32> -> vector<8x128xf32>
    %c1 = arith.constant 1 : index
    %c0_10 = arith.constant 0 : index
    %10 = vector.load %arg13[%c1, %c0_10] : memref<10x128xf32, #tpu.memory_space<vmem>>, vector<8x128xf32>
    %11 = arith.truncf %10 : vector<8x128xf32> to vector<8x128xbf16>
    %c128 = arith.constant 128 : index
    %c0_11 = arith.constant 0 : index
    %12 = vector.load %arg2[%c128, %c0_11] : memref<384x128xbf16, #tpu.memory_space<vmem>>, vector<128x128xbf16>
    %cst_12 = arith.constant dense<0.000000e+00> : vector<8x128xf32>
    %13 = tpu.matmul %11, %12, %cst_12 {dimension_numbers = #tpu.dot_dimension_numbers<[1], [0], [0], [1], [0, 0, 1, 1], [], []>} : vector<8x128xbf16>, vector<128x128xbf16>, vector<8x128xf32> -> vector<8x128xf32>
    %14 = arith.addf %9, %13 : vector<8x128xf32>
    %c2_13 = arith.constant 2 : index
    %c0_14 = arith.constant 0 : index
    %15 = vector.load %arg13[%c2_13, %c0_14] : memref<10x128xf32, #tpu.memory_space<vmem>>, vector<8x128xf32>
    %16 = arith.truncf %15 : vector<8x128xf32> to vector<8x128xbf16>
    %c256 = arith.constant 256 : index
    %c0_15 = arith.constant 0 : index
    %17 = vector.load %arg2[%c256, %c0_15] : memref<384x128xbf16, #tpu.memory_space<vmem>>, vector<128x128xbf16>
    %cst_16 = arith.constant dense<0.000000e+00> : vector<8x128xf32>
    %18 = tpu.matmul %16, %17, %cst_16 {dimension_numbers = #tpu.dot_dimension_numbers<[1], [0], [0], [1], [0, 0, 1, 1], [], []>} : vector<8x128xbf16>, vector<128x128xbf16>, vector<8x128xf32> -> vector<8x128xf32>
    %19 = arith.addf %14, %18 : vector<8x128xf32>
    %c0_17 = arith.constant 0 : index
    %c0_18 = arith.constant 0 : index
    %20 = vector.load %arg3[%c0_17, %c0_18] : memref<1x128xf32, #tpu.memory_space<vmem>>, vector<1x128xf32>
    %21 = vector.broadcast %20 : vector<1x128xf32> to vector<8x128xf32>
    %22 = arith.addf %19, %21 : vector<8x128xf32>
    %cst_19 = arith.constant 0.000000e+00 : f32
    %23 = vector.broadcast %cst_19 : f32 to vector<8x128xf32>
    %24 = arith.maximumf %22, %23 : vector<8x128xf32>
    %cst_20 = arith.constant 0.000000e+00 : f32
    %25 = vector.broadcast %cst_20 : f32 to vector<2x128xf32>
    %c0_21 = arith.constant 0 : index
    %c0_22 = arith.constant 0 : index
    %26 = vector.load %arg14[%c0_21, %c0_22] : memref<10x128xf32, #tpu.memory_space<vmem>>, vector<2x128xf32>
    tpu.vector_store %arg14[%c0_21, %c0_22], %25 {strides = array<i32>} : memref<10x128xf32, #tpu.memory_space<vmem>>, vector<2x128xf32>,
    %c2_23 = arith.constant 2 : index
    %c0_24 = arith.constant 0 : index
    %27 = vector.load %arg14[%c2_23, %c0_24] : memref<10x128xf32, #tpu.memory_space<vmem>>, vector<8x128xf32>
    tpu.vector_store %arg14[%c2_23, %c0_24], %24 {strides = array<i32>} : memref<10x128xf32, #tpu.memory_space<vmem>>, vector<8x128xf32>,
    %c0_25 = arith.constant 0 : index
    %c0_26 = arith.constant 0 : index
    %28 = vector.load %arg14[%c0_25, %c0_26] : memref<10x128xf32, #tpu.memory_space<vmem>>, vector<8x128xf32>
    %29 = arith.truncf %28 : vector<8x128xf32> to vector<8x128xbf16>
    %c0_27 = arith.constant 0 : index
    %c0_28 = arith.constant 0 : index
    %30 = vector.load %arg4[%c0_27, %c0_28] : memref<384x128xbf16, #tpu.memory_space<vmem>>, vector<128x128xbf16>
    %cst_29 = arith.constant dense<0.000000e+00> : vector<8x128xf32>
    %31 = tpu.matmul %29, %30, %cst_29 {dimension_numbers = #tpu.dot_dimension_numbers<[1], [0], [0], [1], [0, 0, 1, 1], [], []>} : vector<8x128xbf16>, vector<128x128xbf16>, vector<8x128xf32> -> vector<8x128xf32>
    %c1_30 = arith.constant 1 : index
    %c0_31 = arith.constant 0 : index
    %32 = vector.load %arg14[%c1_30, %c0_31] : memref<10x128xf32, #tpu.memory_space<vmem>>, vector<8x128xf32>
    %33 = arith.truncf %32 : vector<8x128xf32> to vector<8x128xbf16>
    %c128_32 = arith.constant 128 : index
    %c0_33 = arith.constant 0 : index
    %34 = vector.load %arg4[%c128_32, %c0_33] : memref<384x128xbf16, #tpu.memory_space<vmem>>, vector<128x128xbf16>
    %cst_34 = arith.constant dense<0.000000e+00> : vector<8x128xf32>
    %35 = tpu.matmul %33, %34, %cst_34 {dimension_numbers = #tpu.dot_dimension_numbers<[1], [0], [0], [1], [0, 0, 1, 1], [], []>} : vector<8x128xbf16>, vector<128x128xbf16>, vector<8x128xf32> -> vector<8x128xf32>
    %36 = arith.addf %31, %35 : vector<8x128xf32>
    %c2_35 = arith.constant 2 : index
    %c0_36 = arith.constant 0 : index
    %37 = vector.load %arg14[%c2_35, %c0_36] : memref<10x128xf32, #tpu.memory_space<vmem>>, vector<8x128xf32>
    %38 = arith.truncf %37 : vector<8x128xf32> to vector<8x128xbf16>
    %c256_37 = arith.constant 256 : index
    %c0_38 = arith.constant 0 : index
    %39 = vector.load %arg4[%c256_37, %c0_38] : memref<384x128xbf16, #tpu.memory_space<vmem>>, vector<128x128xbf16>
    %cst_39 = arith.constant dense<0.000000e+00> : vector<8x128xf32>
    %40 = tpu.matmul %38, %39, %cst_39 {dimension_numbers = #tpu.dot_dimension_numbers<[1], [0], [0], [1], [0, 0, 1, 1], [], []>} : vector<8x128xbf16>, vector<128x128xbf16>, vector<8x128xf32> -> vector<8x128xf32>
    %41 = arith.addf %36, %40 : vector<8x128xf32>
    %c0_40 = arith.constant 0 : index
    %c0_41 = arith.constant 0 : index
    %42 = vector.load %arg5[%c0_40, %c0_41] : memref<1x128xf32, #tpu.memory_space<vmem>>, vector<1x128xf32>
    %43 = vector.broadcast %42 : vector<1x128xf32> to vector<8x128xf32>
    %44 = arith.addf %41, %43 : vector<8x128xf32>
    %cst_42 = arith.constant 0.000000e+00 : f32
    %45 = vector.broadcast %cst_42 : f32 to vector<8x128xf32>
    %46 = arith.maximumf %44, %45 : vector<8x128xf32>
    %c0_43 = arith.constant 0 : index
    %c0_44 = arith.constant 0 : index
    %47 = vector.load %arg6[%c0_43, %c0_44] : memref<128x128xbf16, #tpu.memory_space<vmem>>, vector<128x128xbf16>
    %cst_45 = arith.constant dense<0.000000e+00> : vector<8x128xf32>
    %48 = tpu.matmul %1, %47, %cst_45 {dimension_numbers = #tpu.dot_dimension_numbers<[1], [0], [0], [1], [0, 0, 1, 1], [], []>} : vector<8x128xbf16>, vector<128x128xbf16>, vector<8x128xf32> -> vector<8x128xf32>
    %c0_46 = arith.constant 0 : index
    %c0_47 = arith.constant 0 : index
    %49 = vector.load %arg7[%c0_46, %c0_47] : memref<1x128xf32, #tpu.memory_space<vmem>>, vector<1x128xf32>
    %50 = vector.broadcast %49 : vector<1x128xf32> to vector<8x128xf32>
    %51 = arith.addf %48, %50 : vector<8x128xf32>
    %52 = arith.addf %46, %51 : vector<8x128xf32>
    %cst_48 = arith.constant 0.000000e+00 : f32
    %53 = vector.broadcast %cst_48 : f32 to vector<8x128xf32>
    %54 = arith.maximumf %52, %53 : vector<8x128xf32>
    %55 = arith.truncf %54 : vector<8x128xf32> to vector<8x128xbf16>
    %56 = arith.extf %55 : vector<8x128xbf16> to vector<8x128xf32>
    %cst_49 = arith.constant 0.000000e+00 : f32
    %57 = vector.broadcast %cst_49 : f32 to vector<4x128xf32>
    %c0_50 = arith.constant 0 : index
    %c0_51 = arith.constant 0 : index
    %58 = vector.load %arg15[%c0_50, %c0_51] : memref<12x128xf32, #tpu.memory_space<vmem>>, vector<4x128xf32>
    tpu.vector_store %arg15[%c0_50, %c0_51], %57 {strides = array<i32>} : memref<12x128xf32, #tpu.memory_space<vmem>>, vector<4x128xf32>,
    %c4 = arith.constant 4 : index
    %c0_52 = arith.constant 0 : index
    %59 = vector.load %arg15[%c4, %c0_52] : memref<12x128xf32, #tpu.memory_space<vmem>>, vector<8x128xf32>
    tpu.vector_store %arg15[%c4, %c0_52], %56 {strides = array<i32>} : memref<12x128xf32, #tpu.memory_space<vmem>>, vector<8x128xf32>,
    %c0_53 = arith.constant 0 : index
    %c0_54 = arith.constant 0 : index
    %60 = vector.load %arg15[%c0_53, %c0_54] : memref<12x128xf32, #tpu.memory_space<vmem>>, vector<8x128xf32>
    %61 = arith.truncf %60 : vector<8x128xf32> to vector<8x128xbf16>
    %c0_55 = arith.constant 0 : index
    %c0_56 = arith.constant 0 : index
    %62 = vector.load %arg8[%c0_55, %c0_56] : memref<384x128xbf16, #tpu.memory_space<vmem>>, vector<128x128xbf16>
    %cst_57 = arith.constant dense<0.000000e+00> : vector<8x128xf32>
    %63 = tpu.matmul %61, %62, %cst_57 {dimension_numbers = #tpu.dot_dimension_numbers<[1], [0], [0], [1], [0, 0, 1, 1], [], []>} : vector<8x128xbf16>, vector<128x128xbf16>, vector<8x128xf32> -> vector<8x128xf32>
    %c2_58 = arith.constant 2 : index
    %c0_59 = arith.constant 0 : index
    %64 = vector.load %arg15[%c2_58, %c0_59] : memref<12x128xf32, #tpu.memory_space<vmem>>, vector<8x128xf32>
    %65 = arith.truncf %64 : vector<8x128xf32> to vector<8x128xbf16>
    %c128_60 = arith.constant 128 : index
    %c0_61 = arith.constant 0 : index
    %66 = vector.load %arg8[%c128_60, %c0_61] : memref<384x128xbf16, #tpu.memory_space<vmem>>, vector<128x128xbf16>
    %cst_62 = arith.constant dense<0.000000e+00> : vector<8x128xf32>
    %67 = tpu.matmul %65, %66, %cst_62 {dimension_numbers = #tpu.dot_dimension_numbers<[1], [0], [0], [1], [0, 0, 1, 1], [], []>} : vector<8x128xbf16>, vector<128x128xbf16>, vector<8x128xf32> -> vector<8x128xf32>
    %68 = arith.addf %63, %67 : vector<8x128xf32>
    %c4_63 = arith.constant 4 : index
    %c0_64 = arith.constant 0 : index
    %69 = vector.load %arg15[%c4_63, %c0_64] : memref<12x128xf32, #tpu.memory_space<vmem>>, vector<8x128xf32>
    %70 = arith.truncf %69 : vector<8x128xf32> to vector<8x128xbf16>
    %c256_65 = arith.constant 256 : index
    %c0_66 = arith.constant 0 : index
    %71 = vector.load %arg8[%c256_65, %c0_66] : memref<384x128xbf16, #tpu.memory_space<vmem>>, vector<128x128xbf16>
    %cst_67 = arith.constant dense<0.000000e+00> : vector<8x128xf32>
    %72 = tpu.matmul %70, %71, %cst_67 {dimension_numbers = #tpu.dot_dimension_numbers<[1], [0], [0], [1], [0, 0, 1, 1], [], []>} : vector<8x128xbf16>, vector<128x128xbf16>, vector<8x128xf32> -> vector<8x128xf32>
    %73 = arith.addf %68, %72 : vector<8x128xf32>
    %c0_68 = arith.constant 0 : index
    %c0_69 = arith.constant 0 : index
    %74 = vector.load %arg9[%c0_68, %c0_69] : memref<1x128xf32, #tpu.memory_space<vmem>>, vector<1x128xf32>
    %75 = vector.broadcast %74 : vector<1x128xf32> to vector<8x128xf32>
    %76 = arith.addf %73, %75 : vector<8x128xf32>
    %cst_70 = arith.constant 0.000000e+00 : f32
    %77 = vector.broadcast %cst_70 : f32 to vector<8x128xf32>
    %78 = arith.maximumf %76, %77 : vector<8x128xf32>
    %cst_71 = arith.constant 0.000000e+00 : f32
    %79 = vector.broadcast %cst_71 : f32 to vector<4x128xf32>
    %c0_72 = arith.constant 0 : index
    %c0_73 = arith.constant 0 : index
    %80 = vector.load %arg16[%c0_72, %c0_73] : memref<12x128xf32, #tpu.memory_space<vmem>>, vector<4x128xf32>
    tpu.vector_store %arg16[%c0_72, %c0_73], %79 {strides = array<i32>} : memref<12x128xf32, #tpu.memory_space<vmem>>, vector<4x128xf32>,
    %c4_74 = arith.constant 4 : index
    %c0_75 = arith.constant 0 : index
    %81 = vector.load %arg16[%c4_74, %c0_75] : memref<12x128xf32, #tpu.memory_space<vmem>>, vector<8x128xf32>
    tpu.vector_store %arg16[%c4_74, %c0_75], %78 {strides = array<i32>} : memref<12x128xf32, #tpu.memory_space<vmem>>, vector<8x128xf32>,
    %c0_76 = arith.constant 0 : index
    %c0_77 = arith.constant 0 : index
    %82 = vector.load %arg16[%c0_76, %c0_77] : memref<12x128xf32, #tpu.memory_space<vmem>>, vector<8x128xf32>
    %83 = arith.truncf %82 : vector<8x128xf32> to vector<8x128xbf16>
    %c0_78 = arith.constant 0 : index
    %c0_79 = arith.constant 0 : index
    %84 = vector.load %arg10[%c0_78, %c0_79] : memref<384x128xbf16, #tpu.memory_space<vmem>>, vector<128x128xbf16>
    %cst_80 = arith.constant dense<0.000000e+00> : vector<8x128xf32>
    %85 = tpu.matmul %83, %84, %cst_80 {dimension_numbers = #tpu.dot_dimension_numbers<[1], [0], [0], [1], [0, 0, 1, 1], [], []>} : vector<8x128xbf16>, vector<128x128xbf16>, vector<8x128xf32> -> vector<8x128xf32>
    %c2_81 = arith.constant 2 : index
    %c0_82 = arith.constant 0 : index
    %86 = vector.load %arg16[%c2_81, %c0_82] : memref<12x128xf32, #tpu.memory_space<vmem>>, vector<8x128xf32>
    %87 = arith.truncf %86 : vector<8x128xf32> to vector<8x128xbf16>
    %c128_83 = arith.constant 128 : index
    %c0_84 = arith.constant 0 : index
    %88 = vector.load %arg10[%c128_83, %c0_84] : memref<384x128xbf16, #tpu.memory_space<vmem>>, vector<128x128xbf16>
    %cst_85 = arith.constant dense<0.000000e+00> : vector<8x128xf32>
    %89 = tpu.matmul %87, %88, %cst_85 {dimension_numbers = #tpu.dot_dimension_numbers<[1], [0], [0], [1], [0, 0, 1, 1], [], []>} : vector<8x128xbf16>, vector<128x128xbf16>, vector<8x128xf32> -> vector<8x128xf32>
    %90 = arith.addf %85, %89 : vector<8x128xf32>
    %c4_86 = arith.constant 4 : index
    %c0_87 = arith.constant 0 : index
    %91 = vector.load %arg16[%c4_86, %c0_87] : memref<12x128xf32, #tpu.memory_space<vmem>>, vector<8x128xf32>
    %92 = arith.truncf %91 : vector<8x128xf32> to vector<8x128xbf16>
    %c256_88 = arith.constant 256 : index
    %c0_89 = arith.constant 0 : index
    %93 = vector.load %arg10[%c256_88, %c0_89] : memref<384x128xbf16, #tpu.memory_space<vmem>>, vector<128x128xbf16>
    %cst_90 = arith.constant dense<0.000000e+00> : vector<8x128xf32>
    %94 = tpu.matmul %92, %93, %cst_90 {dimension_numbers = #tpu.dot_dimension_numbers<[1], [0], [0], [1], [0, 0, 1, 1], [], []>} : vector<8x128xbf16>, vector<128x128xbf16>, vector<8x128xf32> -> vector<8x128xf32>
    %95 = arith.addf %90, %94 : vector<8x128xf32>
    %c0_91 = arith.constant 0 : index
    %c0_92 = arith.constant 0 : index
    %96 = vector.load %arg11[%c0_91, %c0_92] : memref<1x128xf32, #tpu.memory_space<vmem>>, vector<1x128xf32>
    %97 = vector.broadcast %96 : vector<1x128xf32> to vector<8x128xf32>
    %98 = arith.addf %95, %97 : vector<8x128xf32>
    %cst_93 = arith.constant 0.000000e+00 : f32
    %99 = vector.broadcast %cst_93 : f32 to vector<8x128xf32>
    %100 = arith.maximumf %98, %99 : vector<8x128xf32>
    %101 = arith.addf %100, %56 : vector<8x128xf32>
    %cst_94 = arith.constant 0.000000e+00 : f32
    %102 = vector.broadcast %cst_94 : f32 to vector<8x128xf32>
    %103 = arith.maximumf %101, %102 : vector<8x128xf32>
    %104 = arith.truncf %103 : vector<8x128xf32> to vector<8x128xbf16>
    %c0_95 = arith.constant 0 : index
    %c0_96 = arith.constant 0 : index
    %c0_97 = arith.constant 0 : index
    %105 = vector.load %arg12[%c0_95, %c0_96, %c0_97] : memref<1x8x128xbf16, #tpu.memory_space<vmem>>, vector<1x8x128xbf16>
    %106 = vector.shape_cast %105 : vector<1x8x128xbf16> to vector<8x128xbf16>
    %107 = vector.shape_cast %104 : vector<8x128xbf16> to vector<1x8x128xbf16>
    tpu.vector_store %arg12[%c0_95, %c0_96, %c0_97], %107 {strides = array<i32>} : memref<1x8x128xbf16, #tpu.memory_space<vmem>>, vector<1x8x128xbf16>,
    return
  }
  func.func @transform_0(%arg0: i32) -> (i32, i32, i32) {
    %c0_i32 = arith.constant 0 : i32
    %c0_i32_0 = arith.constant 0 : i32
    %c0_i32_1 = arith.constant 0 : i32
    return %arg0, %c0_i32, %c0_i32_0 : i32, i32, i32
  }
  func.func @transform_1(%arg0: i32) -> (i32, i32) {
    %c0_i32 = arith.constant 0 : i32
    %c0_i32_0 = arith.constant 0 : i32
    %c0_i32_1 = arith.constant 0 : i32
    return %c0_i32, %c0_i32_0 : i32, i32
  }
  func.func @transform_2(%arg0: i32) -> (i32, i32) {
    %c0_i32 = arith.constant 0 : i32
    %c0_i32_0 = arith.constant 0 : i32
    %c0_i32_1 = arith.constant 0 : i32
    return %c0_i32, %c0_i32_0 : i32, i32
  }
  func.func @transform_3(%arg0: i32) -> (i32, i32) {
    %c0_i32 = arith.constant 0 : i32
    %c0_i32_0 = arith.constant 0 : i32
    %c0_i32_1 = arith.constant 0 : i32
    return %c0_i32, %c0_i32_0 : i32, i32
  }
  func.func @transform_4(%arg0: i32) -> (i32, i32) {
    %c0_i32 = arith.constant 0 : i32
    %c0_i32_0 = arith.constant 0 : i32
    %c0_i32_1 = arith.constant 0 : i32
    return %c0_i32, %c0_i32_0 : i32, i32
  }
  func.func @transform_5(%arg0: i32) -> (i32, i32) {
    %c0_i32 = arith.constant 0 : i32
    %c0_i32_0 = arith.constant 0 : i32
    %c0_i32_1 = arith.constant 0 : i32
    return %c0_i32, %c0_i32_0 : i32, i32
  }
  func.func @transform_6(%arg0: i32) -> (i32, i32) {
    %c0_i32 = arith.constant 0 : i32
    %c0_i32_0 = arith.constant 0 : i32
    %c0_i32_1 = arith.constant 0 : i32
    return %c0_i32, %c0_i32_0 : i32, i32
  }
  func.func @transform_7(%arg0: i32) -> (i32, i32) {
    %c0_i32 = arith.constant 0 : i32
    %c0_i32_0 = arith.constant 0 : i32
    %c0_i32_1 = arith.constant 0 : i32
    return %c0_i32, %c0_i32_0 : i32, i32
  }
  func.func @transform_8(%arg0: i32) -> (i32, i32) {
    %c0_i32 = arith.constant 0 : i32
    %c0_i32_0 = arith.constant 0 : i32
    %c0_i32_1 = arith.constant 0 : i32
    return %c0_i32, %c0_i32_0 : i32, i32
  }
  func.func @transform_9(%arg0: i32) -> (i32, i32) {
    %c0_i32 = arith.constant 0 : i32
    %c0_i32_0 = arith.constant 0 : i32
    %c0_i32_1 = arith.constant 0 : i32
    return %c0_i32, %c0_i32_0 : i32, i32
  }
  func.func @transform_10(%arg0: i32) -> (i32, i32) {
    %c0_i32 = arith.constant 0 : i32
    %c0_i32_0 = arith.constant 0 : i32
    %c0_i32_1 = arith.constant 0 : i32
    return %c0_i32, %c0_i32_0 : i32, i32
  }
  func.func @transform_11(%arg0: i32) -> (i32, i32, i32) {
    %c0_i32 = arith.constant 0 : i32
    %c0_i32_0 = arith.constant 0 : i32
    %c0_i32_1 = arith.constant 0 : i32
    return %arg0, %c0_i32, %c0_i32_0 : i32, i32, i32
  }
}

module attributes {stable_mosaic.version = 11 : i64} {
  func.func @_decoder_kernel(%arg0: i32, %arg1: i32, %arg2: memref<256x128xbf16, #tpu.memory_space<vmem>>, %arg3: memref<128x128xbf16, #tpu.memory_space<vmem>>, %arg4: memref<1x128xf32, #tpu.memory_space<vmem>>, %arg5: memref<256x128xf32, #tpu.memory_space<vmem>>) attributes {dimension_semantics = [#tpu.dimension_semantics<parallel>, #tpu.dimension_semantics<parallel>], iteration_bounds = array<i64: 1, 1>, scalar_prefetch = 0 : i64, scratch_operands = 0 : i64, tpu.core_type = #tpu.core_type<tc>, window_params = [{transform_indices = @transform_0, window_bounds = array<i64: 256, 128>}, {transform_indices = @transform_1, window_bounds = array<i64: 128, 128>}, {transform_indices = @transform_2, window_bounds = array<i64: 1, 128>}, {transform_indices = @transform_3, window_bounds = array<i64: 256, 128>}]} {
    %c0 = arith.constant 0 : index
    %c0_0 = arith.constant 0 : index
    %0 = vector.load %arg2[%c0, %c0_0] : memref<256x128xbf16, #tpu.memory_space<vmem>>, vector<256x128xbf16>
    %c0_1 = arith.constant 0 : index
    %c0_2 = arith.constant 0 : index
    %1 = vector.load %arg3[%c0_1, %c0_2] : memref<128x128xbf16, #tpu.memory_space<vmem>>, vector<128x128xbf16>
    %cst = arith.constant dense<0.000000e+00> : vector<256x128xf32>
    %2 = tpu.matmul %0, %1, %cst {dimension_numbers = #tpu.dot_dimension_numbers<[1], [0], [0], [1], [0, 0, 1, 1], [], []>} : vector<256x128xbf16>, vector<128x128xbf16>, vector<256x128xf32> -> vector<256x128xf32>
    %c0_3 = arith.constant 0 : index
    %c0_4 = arith.constant 0 : index
    %3 = vector.load %arg4[%c0_3, %c0_4] : memref<1x128xf32, #tpu.memory_space<vmem>>, vector<1x128xf32>
    %4 = vector.broadcast %3 : vector<1x128xf32> to vector<256x128xf32>
    %5 = arith.addf %2, %4 : vector<256x128xf32>
    %c0_5 = arith.constant 0 : index
    %c0_6 = arith.constant 0 : index
    %6 = vector.load %arg5[%c0_5, %c0_6] : memref<256x128xf32, #tpu.memory_space<vmem>>, vector<256x128xf32>
    tpu.vector_store %arg5[%c0_5, %c0_6], %5 {strides = array<i32>} : memref<256x128xf32, #tpu.memory_space<vmem>>, vector<256x128xf32>,
    return
  }
  func.func @transform_0(%arg0: i32, %arg1: i32) -> (i32, i32) {
    %c0_i32 = arith.constant 0 : i32
    %c0_i32_0 = arith.constant 0 : i32
    return %arg1, %c0_i32 : i32, i32
  }
  func.func @transform_1(%arg0: i32, %arg1: i32) -> (i32, i32) {
    %c0_i32 = arith.constant 0 : i32
    %c0_i32_0 = arith.constant 0 : i32
    return %c0_i32, %arg0 : i32, i32
  }
  func.func @transform_2(%arg0: i32, %arg1: i32) -> (i32, i32) {
    %c0_i32 = arith.constant 0 : i32
    %c0_i32_0 = arith.constant 0 : i32
    return %c0_i32, %arg0 : i32, i32
  }
  func.func @transform_3(%arg0: i32, %arg1: i32) -> (i32, i32) {
    %c0_i32 = arith.constant 0 : i32
    return %arg1, %arg0 : i32, i32
  }
}

</mosaic_0001>

<bundles_post_ra>
// kernel: mytcn_forward.3
= control target key start
LH: loop header
LB: loop body
LE: loop exit
PB: predicated region body
PF: predicated region fallthrough
CT: control target
= control target key end

     0   :  { %s773_s1 = inlined_call_operand.vmem [shape: bf16[128,128], index: 1, kind: input, shape index: {}]   ;;  %s774_s0 = inlined_call_operand.vmem [shape: bf16[256,128], index: 0, kind: input, shape index: {}]   ;;  %s775_s2 = inlined_call_operand.vmem [shape: f32[1,128], index: 2, kind: input, shape index: {}]   ;;  %s776_s3 = inlined_call_operand.vmem [shape: f32[256,128], index: 3, kind: output, shape index: {}]  }
   0x1   :  { %v524_v0 = vld [vmem:[%s773_s1 + $0x38] sm:$0xff]   ;;  %v525_v1 = vld [vmem:[%s773_s1 + $0x30] sm:$0xff]   ;;  %v526_v2 = vld [vmem:[%s773_s1 + $0x28] sm:$0xff]  }
   0x2   :  { %460 = vmatprep.subr.bf16.mxu0 %v524_v0  ;;  %508 = vmatprep.subr.bf16.mxu1 %v524_v0  ;;  %v527_v3 = vld [vmem:[%s773_s1 + $0x20] sm:$0xff]   ;;  %v528_v6 = vld [vmem:[%s773_s1 + $0x18] sm:$0xff]   ;;  %v529_v7 = vld [vmem:[%s773_s1 + $0x10] sm:$0xff]  }
   0x3   :  { %461 = vmatpush3.bf16.msra.mxu0 %v524_v0  ;;  %516 = vmatpush3.bf16.msra.mxu1 %v524_v0  ;;  %v532_v4 = vld [vmem:[%s774_s0] sm:$0xff]   ;;  %v530_v8 = vld [vmem:[%s773_s1 + $0x8] sm:$0xff]   ;;  %v536_v12 = vld [vmem:[%s774_s0 + $0x10] sm:$0xff]  }
   0x4   :  { %462 = vmatprep.subr.bf16.mxu0 %v525_v1  ;;  %509 = vmatprep.subr.bf16.mxu1 %v525_v1  ;;  %v533_v5 = vld [vmem:[%s774_s0 + $0x40] sm:$0xff]   ;;  %v534_v10 = vld [vmem:[%s774_s0 + $0x8] sm:$0xff]   ;;  %v537_v13 = vld [vmem:[%s774_s0 + $0x50] sm:$0xff]  }
   0x5   :  { %476 = vmatprep.mubr.bf16.mxu0 %v532_v4  ;;  %492 = vmatprep.mubr.bf16.mxu1 %v533_v5  ;;  %v531_v9 = vld [vmem:[%s773_s1] sm:$0xff]   ;;  %v535_v11 = vld [vmem:[%s774_s0 + $0x48] sm:$0xff]   ;;  %v538_v14 = vld [vmem:[%s774_s0 + $0x18] sm:$0xff]  }
   0x6   :  { %v539_v15 = vld [vmem:[%s774_s0 + $0x58] sm:$0xff]   ;;  %v540_v16 = vld [vmem:[%s774_s0 + $0x20] sm:$0xff]   ;;  %v542_v18 = vld [vmem:[%s774_s0 + $0x28] sm:$0xff]  }
   0x7   :  { %463 = vmatpush3.bf16.msra.mxu0 %v525_v1  ;;  %517 = vmatpush3.bf16.msra.mxu1 %v525_v1  ;;  %v541_v17 = vld [vmem:[%s774_s0 + $0x60] sm:$0xff]   ;;  %v543_v19 = vld [vmem:[%s774_s0 + $0x68] sm:$0xff]   ;;  %v544_v20 = vld [vmem:[%s774_s0 + $0x30] sm:$0xff]  }
   0x8   :  { %464 = vmatprep.subr.bf16.mxu0 %v526_v2  ;;  %510 = vmatprep.subr.bf16.mxu1 %v526_v2  ;;  %v545_v21 = vld [vmem:[%s774_s0 + $0x70] sm:$0xff]   ;;  %v546_v22 = vld [vmem:[%s774_s0 + $0x38] sm:$0xff]   ;;  %v643_v24 = vld [vmem:[%s775_s2] ss:$0 sm:$0xff] }
   0x9   :  { %v547_v23 = vld [vmem:[%s774_s0 + $0x78] sm:$0xff]  }
   0xb   :  { %465 = vmatpush3.bf16.msra.mxu0 %v526_v2  ;;  %518 = vmatpush3.bf16.msra.mxu1 %v526_v2 }
   0xc   :  { %466 = vmatprep.subr.bf16.mxu0 %v527_v3  ;;  %511 = vmatprep.subr.bf16.mxu1 %v527_v3 }
   0xf   :  { %467 = vmatpush3.bf16.msra.mxu0 %v527_v3  ;;  %519 = vmatpush3.bf16.msra.mxu1 %v527_v3 }
  0x10   :  { %468 = vmatprep.subr.bf16.mxu0 %v528_v6  ;;  %512 = vmatprep.subr.bf16.mxu1 %v528_v6 }
  0x13   :  { %469 = vmatpush3.bf16.msra.mxu0 %v528_v6  ;;  %520 = vmatpush3.bf16.msra.mxu1 %v528_v6 }
  0x14   :  { %470 = vmatprep.subr.bf16.mxu0 %v529_v7  ;;  %513 = vmatprep.subr.bf16.mxu1 %v529_v7 }
  0x17   :  { %471 = vmatpush3.bf16.msra.mxu0 %v529_v7  ;;  %521 = vmatpush3.bf16.msra.mxu1 %v529_v7 }
  0x18   :  { %472 = vmatprep.subr.bf16.mxu0 %v530_v8  ;;  %514 = vmatprep.subr.bf16.mxu1 %v530_v8 }
  0x1b   :  { %473 = vmatpush3.bf16.msra.mxu0 %v530_v8  ;;  %522 = vmatpush3.bf16.msra.mxu1 %v530_v8 }
  0x1c   :  { %474 = vmatprep.subr.bf16.mxu0 %v531_v9  ;;  %515 = vmatprep.subr.bf16.mxu1 %v531_v9 }
  0x1f   :  { %475 = vmatpush3.bf16.msra.mxu0 %v531_v9  ;;  %523 = vmatpush3.bf16.msra.mxu1 %v531_v9 }
  0x22   :  { %477 = vmatmul.mubr.bf16.vlgmr.msra.gmra.mxu0 %v534_v10  ;;  %493 = vmatmul.mubr.bf16.vlgmr.msra.gmra.mxu1 %v535_v11 }
  0x23   :  { %480 = vmatprep.mubr.bf16.mxu0 %v536_v12  ;;  %496 = vmatprep.mubr.bf16.mxu1 %v537_v13 }
  0x2a   :  { %481 = vmatmul.mubr.bf16.gmra.mxu0 %v538_v14  ;;  %497 = vmatmul.mubr.bf16.gmra.mxu1 %v539_v15 }
  0x2b   :  { %484 = vmatprep.mubr.bf16.mxu0 %v540_v16  ;;  %500 = vmatprep.mubr.bf16.mxu1 %v541_v17 }
  0x32   :  { %485 = vmatmul.mubr.bf16.gmra.mxu0 %v542_v18  ;;  %501 = vmatmul.mubr.bf16.gmra.mxu1 %v543_v19 }
  0x33   :  { %488 = vmatprep.mubr.bf16.mxu0 %v544_v20  ;;  %504 = vmatprep.mubr.bf16.mxu1 %v545_v21 }
  0x3a   :  { %489 = vmatmul.mubr.bf16.gmra.mxu0 %v546_v22  ;;  %505 = vmatmul.mubr.bf16.gmra.mxu1 %v547_v23 }
  0xe2   :  { %v478_v25 = vpop.f32.mrf.mxu0  ;;  %v494_v26 = vpop.f32.mrf.mxu1 }
  0xe3   :  { %v257_v27 = vadd.f32 %v478_v25, %v643_v24  ;;  %v321_v28 = vadd.f32 %v494_v26, %v643_v24 }
  0xe4   :  { %v248_v29 = vpop.f32.mrf.mxu0  ;;  %v312_v30 = vpop.f32.mrf.mxu1 }
  0xe5   :  { %377 = vst [vmem:[%s776_s3 + $0x10] sm:$0xff] %v257_v27  ;;  %393 = vst [vmem:[%s776_s3 + $0x90] sm:$0xff] %v321_v28  ;;  %v249_v31 = vadd.f32 %v643_v24, %v248_v29  ;;  %v313_v32 = vadd.f32 %v643_v24, %v312_v30 }
  0xe6   :  { %v479_v33 = vpop.f32.mrf.mxu0  ;;  %v495_v34 = vpop.f32.mrf.mxu1 }
  0xe7   :  { %375 = vst [vmem:[%s776_s3] sm:$0xff] %v249_v31  ;;  %391 = vst [vmem:[%s776_s3 + $0x80] sm:$0xff] %v313_v32  ;;  %v260_v35 = vadd.f32 %v479_v33, %v643_v24  ;;  %v324_v36 = vadd.f32 %v495_v34, %v643_v24 }
  0xe8   :  { %v251_v37 = vpop.f32.mrf.mxu0  ;;  %v315_v38 = vpop.f32.mrf.mxu1 }
  0xe9   :  { %378 = vst [vmem:[%s776_s3 + $0x18] sm:$0xff] %v260_v35  ;;  %394 = vst [vmem:[%s776_s3 + $0x98] sm:$0xff] %v324_v36  ;;  %v252_v39 = vadd.f32 %v643_v24, %v251_v37  ;;  %v316_v40 = vadd.f32 %v643_v24, %v315_v38 }
  0xea   :  { %v482_v41 = vpop.f32.mrf.mxu0  ;;  %v498_v42 = vpop.f32.mrf.mxu1 }
  0xeb   :  { %376 = vst [vmem:[%s776_s3 + $0x8] sm:$0xff] %v252_v39  ;;  %392 = vst [vmem:[%s776_s3 + $0x88] sm:$0xff] %v316_v40  ;;  %v273_v43 = vadd.f32 %v482_v41, %v643_v24  ;;  %v337_v44 = vadd.f32 %v498_v42, %v643_v24 }
  0xec   :  { %v264_v45 = vpop.f32.mrf.mxu0  ;;  %v328_v46 = vpop.f32.mrf.mxu1 }
  0xed   :  { %381 = vst [vmem:[%s776_s3 + $0x30] sm:$0xff] %v273_v43  ;;  %397 = vst [vmem:[%s776_s3 + $0xb0] sm:$0xff] %v337_v44  ;;  %v265_v47 = vadd.f32 %v643_v24, %v264_v45  ;;  %v329_v48 = vadd.f32 %v643_v24, %v328_v46 }
  0xee   :  { %v483_v49 = vpop.f32.mrf.mxu0  ;;  %v499_v50 = vpop.f32.mrf.mxu1 }
  0xef   :  { %379 = vst [vmem:[%s776_s3 + $0x20] sm:$0xff] %v265_v47  ;;  %395 = vst [vmem:[%s776_s3 + $0xa0] sm:$0xff] %v329_v48  ;;  %v276_v51 = vadd.f32 %v483_v49, %v643_v24  ;;  %v340_v52 = vadd.f32 %v499_v50, %v643_v24 }
  0xf0   :  { %v267_v53 = vpop.f32.mrf.mxu0  ;;  %v331_v54 = vpop.f32.mrf.mxu1 }
  0xf1   :  { %382 = vst [vmem:[%s776_s3 + $0x38] sm:$0xff] %v276_v51  ;;  %398 = vst [vmem:[%s776_s3 + $0xb8] sm:$0xff] %v340_v52  ;;  %v268_v55 = vadd.f32 %v643_v24, %v267_v53  ;;  %v332_v56 = vadd.f32 %v643_v24, %v331_v54 }
  0xf2   :  { %v486_v57 = vpop.f32.mrf.mxu0  ;;  %v502_v58 = vpop.f32.mrf.mxu1 }
  0xf3   :  { %380 = vst [vmem:[%s776_s3 + $0x28] sm:$0xff] %v268_v55  ;;  %396 = vst [vmem:[%s776_s3 + $0xa8] sm:$0xff] %v332_v56  ;;  %v289_v59 = vadd.f32 %v486_v57, %v643_v24  ;;  %v353_v60 = vadd.f32 %v502_v58, %v643_v24 }
  0xf4   :  { %v280_v61 = vpop.f32.mrf.mxu0  ;;  %v344_v62 = vpop.f32.mrf.mxu1 }
  0xf5   :  { %385 = vst [vmem:[%s776_s3 + $0x50] sm:$0xff] %v289_v59  ;;  %401 = vst [vmem:[%s776_s3 + $0xd0] sm:$0xff] %v353_v60  ;;  %v281_v63 = vadd.f32 %v643_v24, %v280_v61  ;;  %v345_v0 = vadd.f32 %v643_v24, %v344_v62 }
  0xf6   :  { %v487_v1 = vpop.f32.mrf.mxu0  ;;  %v503_v2 = vpop.f32.mrf.mxu1 }
  0xf7   :  { %383 = vst [vmem:[%s776_s3 + $0x40] sm:$0xff] %v281_v63  ;;  %399 = vst [vmem:[%s776_s3 + $0xc0] sm:$0xff] %v345_v0  ;;  %v292_v3 = vadd.f32 %v487_v1, %v643_v24  ;;  %v356_v4 = vadd.f32 %v503_v2, %v643_v24 }
  0xf8   :  { %v283_v5 = vpop.f32.mrf.mxu0  ;;  %v347_v6 = vpop.f32.mrf.mxu1 }
  0xf9   :  { %386 = vst [vmem:[%s776_s3 + $0x58] sm:$0xff] %v292_v3  ;;  %402 = vst [vmem:[%s776_s3 + $0xd8] sm:$0xff] %v356_v4  ;;  %v284_v7 = vadd.f32 %v643_v24, %v283_v5  ;;  %v348_v8 = vadd.f32 %v643_v24, %v347_v6 }
  0xfa   :  { %v490_v9 = vpop.f32.mrf.mxu0  ;;  %v506_v10 = vpop.f32.mrf.mxu1 }
  0xfb   :  { %384 = vst [vmem:[%s776_s3 + $0x48] sm:$0xff] %v284_v7  ;;  %400 = vst [vmem:[%s776_s3 + $0xc8] sm:$0xff] %v348_v8  ;;  %v305_v11 = vadd.f32 %v490_v9, %v643_v24  ;;  %v369_v12 = vadd.f32 %v506_v10, %v643_v24 }
  0xfc   :  { %v296_v13 = vpop.f32.mrf.mxu0  ;;  %v360_v14 = vpop.f32.mrf.mxu1 }
  0xfd   :  { %389 = vst [vmem:[%s776_s3 + $0x70] sm:$0xff] %v305_v11  ;;  %405 = vst [vmem:[%s776_s3 + $0xf0] sm:$0xff] %v369_v12  ;;  %v297_v15 = vadd.f32 %v643_v24, %v296_v13  ;;  %v361_v16 = vadd.f32 %v643_v24, %v360_v14 }
  0xfe   :  { %v491_v17 = vpop.f32.mrf.mxu0  ;;  %v507_v18 = vpop.f32.mrf.mxu1 }
  0xff   :  { %387 = vst [vmem:[%s776_s3 + $0x60] sm:$0xff] %v297_v15  ;;  %403 = vst [vmem:[%s776_s3 + $0xe0] sm:$0xff] %v361_v16  ;;  %v308_v19 = vadd.f32 %v491_v17, %v643_v24  ;;  %v372_v20 = vadd.f32 %v507_v18, %v643_v24 }
 0x100   :  { %v299_v21 = vpop.f32.mrf.mxu0  ;;  %v363_v22 = vpop.f32.mrf.mxu1 }
 0x101   :  { %390 = vst [vmem:[%s776_s3 + $0x78] sm:$0xff] %v308_v19  ;;  %406 = vst [vmem:[%s776_s3 + $0xf8] sm:$0xff] %v372_v20  ;;  %v300_v23 = vadd.f32 %v643_v24, %v299_v21  ;;  %v364_v25 = vadd.f32 %v643_v24, %v363_v22 }
 0x103   :  { %388 = vst [vmem:[%s776_s3 + $0x68] sm:$0xff] %v300_v23  ;;  %404 = vst [vmem:[%s776_s3 + $0xe8] sm:$0xff] %v364_v25 }

// kernel: mytcn_forward.2
= control target key start
LH: loop header
LB: loop body
LE: loop exit
PB: predicated region body
PF: predicated region fallthrough
CT: control target
= control target key end

     0   :  { %16 = vsyncpa [#allocation7], 0  ;;  %s3139_s0 = inlined_call_operand.vmem [shape: bf16[2,8,128], index: 0, kind: input, shape index: {}]   ;;  %s3140_s1 = inlined_call_operand.hbm [shape: bf16[384,128], index: 1, kind: input, shape index: {}]   ;;  %s3141_s2 = inlined_call_operand.vmem [shape: f32[1,128], index: 2, kind: input, shape index: {}]   ;;  %s3142_s3 = inlined_call_operand.hbm [shape: bf16[384,128], index: 3, kind: input, shape index: {}]   ;;  %s3143_s4 = inlined_call_operand.vmem [shape: f32[1,128], index: 4, kind: input, shape index: {}]   ;;  %s3144_s5 = inlined_call_operand.vmem [shape: bf16[128,128], index: 5, kind: input, shape index: {}]   ;;  %s3145_s6 = inlined_call_operand.vmem [shape: f32[1,128], index: 6, kind: input, shape index: {}]   ;;  %s3146_s7 = inlined_call_operand.hbm [shape: bf16[384,128], index: 7, kind: input, shape index: {}]   ;;  %s3147_s8 = inlined_call_operand.vmem [shape: f32[1,128], index: 8, kind: input, shape index: {}]   ;;  %s3148_s9 = inlined_call_operand.hbm [shape: bf16[384,128], index: 9, kind: input, shape index: {}]   ;;  %s3149_s10 = inlined_call_operand.vmem [shape: f32[1,128], index: 10, kind: input, shape index: {}]   ;;  %s3150_s11 = inlined_call_operand.vmem [shape: bf16[2,8,128], index: 11, kind: output, shape index: {}]  }
   0x1   :  { %17 = vsyncpa [#allocation9], 0 }
   0x2   :  { %18 = vsyncpa [#allocation12], 0  ;;  %s2832_s17 = smov 0  }
   0x3 LB: > { %s2838_s18 = sadd.s32 4294967295, %s2762_s17   ;;  %p1979_p0 = scmp.ge.s32.totalorder %s2762_s17, 1  ;;  %s2762_s17 = sphi %s2832_s17, %s24_s17  }
   0x4   : > { %p291_p1 = scmp.lt.s32.totalorder %s2762_s17, 3  ;;  %p2509_p2 = scmp.eq.s32.totalorder %s2838_s18, 0 }
   0x5   : > { %s2764_s20 = smov [#allocation8]   ;;  %s2765_s22 = smov [#allocation6]  }
   0x6   : > { %p2843_p3 = pnand %p1979_p0, %p291_p1  ;;  %s319_s21 = sshll.u32 %s2764_s20, 4  ;;  %s320_s21 = int_to_ptr.vmem [resolvable:$true] %s319_s21 }
   0x7   : > { %s303_s23 = sshll.u32 %s2765_s22, 4  ;;  %s2766_s25 = smov [#allocation10]   ;;  %s2849_s23 = int_to_ptr.vmem [resolvable:$true] %s303_s23 }
   0x8   : > { %p2496_p4 = pneg %p2843_p3  ;;  %s341_s26 = sshll.u32 %s2766_s25, 4  ;;  %s2857_s26 = int_to_ptr.vmem [resolvable:$true] %s341_s26 }
   0x9   : > { %s2767_s27 = smov [#allocation11]   ;;  %s2650_s29 = scalar_lea.vmem %s320_s21, 3072 }
   0xa   : > { %p2853_p5 = pnand %p2509_p2, %p2496_p4  ;;  %s2859_s28 = sshll.u32 %s2767_s27, 4  ;;  %s358_s28 = int_to_ptr.vmem [resolvable:$true] %s2859_s28 }
   0xb   : > { %p2651_p7 = scmp.ne.s32.totalorder %s320_s21, %s2650_s29  ;;  %p2658_p10 = scmp.lt.s32.totalorder %s320_s21, %s320_s21 }
   0xc   : > { %p2641_p6 = pneg %p2853_p5  ;;  %p2659_p11 = scmp.lt.s32.totalorder %s2650_s29, %s2650_s29 }
   0xe   : > { %p2653_p8 = pnand %p2651_p7, %p2641_p6  ;;  %p2660_p12 = por %p2659_p11, %p2658_p10 }
  0x10   : > { %p2654_p9 = pneg %p2653_p8 }
  0x12   : > { %p2661_p13 = pnand %p2660_p12, %p2654_p9 }
  0x14   : > { %2664 = shalt.err (!%p2661_p13)
}
  0x15   : > { %s2768_s30 = smov 64   ;;  %s2769_s12 = smov 4  }
  0x16   : > { %2502 = dma.hbm_to_vmem [thread:$0]  (!%p2853_p5), %s3142_s3, 3072, %s320_s21, [#allocation9], %s2768_s30, %s2768_s30, %s2769_s12  }
  0x17   : > { %s2676_s15 = scalar_lea.vmem %s2849_s23, 3072  ;;  %p2684_p7 = scmp.lt.s32.totalorder %s2849_s23, %s2849_s23 }
  0x18   : > { %p2677_p0 = scmp.ne.s32.totalorder %s2849_s23, %s2676_s15  ;;  %p2685_p8 = scmp.lt.s32.totalorder %s2676_s15, %s2676_s15 }
  0x1a   : > { %p2679_p1 = pnand %p2677_p0, %p2641_p6  ;;  %p2686_p9 = por %p2685_p8, %p2684_p7 }
  0x1c   : > { %p2680_p4 = pneg %p2679_p1 }
  0x1e   : > { %p2687_p10 = pnand %p2686_p9, %p2680_p4 }
  0x20   : > { %2690 = shalt.err (!%p2687_p10)
}
  0x21   : > { %2499 = dma.hbm_to_vmem [thread:$0]  (!%p2853_p5), %s3140_s1, 3072, %s2849_s23, [#allocation7], %s2768_s30, %s2768_s30, %s2769_s12  }
  0x22   : > { %s2702_s21 = scalar_lea.vmem %s2857_s26, 3072  ;;  %p2710_p0 = scmp.lt.s32.totalorder %s2857_s26, %s2857_s26 }
  0x23   : > { %p2703_p11 = scmp.ne.s32.totalorder %s2857_s26, %s2702_s21  ;;  %p2711_p1 = scmp.lt.s32.totalorder %s2702_s21, %s2702_s21 }
  0x25   : > { %p2705_p12 = pnand %p2703_p11, %p2641_p6  ;;  %p2712_p4 = por %p2711_p1, %p2710_p0 }
  0x27   : > { %p2706_p13 = pneg %p2705_p12 }
  0x29   : > { %p2713_p7 = pnand %p2712_p4, %p2706_p13 }
  0x2b   : > { %2716 = shalt.err (!%p2713_p7)
}
  0x2c   : > { %2505 = dma.hbm_to_vmem [thread:$0]  (!%p2853_p5), %s3146_s7, 3072, %s2857_s26, [#allocation9], %s2768_s30, %s2768_s30, %s2769_s12  }
  0x2d   : > { %s2728_s25 = scalar_lea.vmem %s358_s28, 3072  ;;  %p2736_p11 = scmp.lt.s32.totalorder %s358_s28, %s358_s28 }
  0x2e   : > { %p2729_p8 = scmp.ne.s32.totalorder %s358_s28, %s2728_s25  ;;  %p2737_p12 = scmp.lt.s32.totalorder %s2728_s25, %s2728_s25 }
  0x30   : > { %p2731_p9 = pnand %p2729_p8, %p2641_p6  ;;  %p2738_p13 = por %p2737_p12, %p2736_p11 }
  0x32   : > { %p2732_p10 = pneg %p2731_p9 }
  0x34   : > { %p2739_p0 = pnand %p2738_p13, %p2732_p10 }
  0x36   : > { %2742 = shalt.err (!%p2739_p0)
}
  0x37   : > { %2508 = dma.hbm_to_vmem [thread:$0]  (!%p2853_p5), %s3148_s9, 3072, %s358_s28, [#allocation12], %s2768_s30, %s2768_s30, %s2769_s12  }
  0x38   : > { %383 = sbr.rel (%p2843_p3) target bundleno = 1069 (0x42d), region = 64 }
  0x3d   : > { %2748 = dma.done.wait (%p2509_p2), [#allocation7], 3072  }
  0x3e   : > { %2750 = vsyncadd (%p2509_p2), [#allocation7], 4294964224 }
  0x3f   : > { %2752 = dma.done.wait (%p2509_p2), [#allocation9], 6144  }
  0x40   : > { %2754 = vsyncadd (%p2509_p2), [#allocation9], 4294961152 }
  0x41   : > { %2756 = dma.done.wait (%p2509_p2), [#allocation12], 3072  }
  0x42   : > { %2758 = vsyncadd (%p2509_p2), [#allocation12], 4294964224  ;;  %v2770_v0 = vmov 0.0   ;;  %vm2771_vm0 = vmmov 0   ;;  %v2533_v1 = vld [vmem:[#allocation6 + $0x78] sm:$0xff]   ;;  %v2535_v3 = vld [vmem:[#allocation6 + $0x70] sm:$0xff]  }
  0x43   : > { %2220 = vmatprep.subr.bf16.mxu0 %v2770_v0  ;;  %444 = vst [vmem:[#allocation2] sm:$0x3] %v2770_v0  ;;  %774 = vst [vmem:[#allocation3] sm:$0x3] %v2770_v0  ;;  %2240 = vmatprep.subr.bf16.mxu1 %v2770_v0  ;;  %v2534_v2 = vld [vmem:[#allocation6 + $0x38] sm:$0xff]   ;;  %p433_p2 = scmp.lt.s32.totalorder %s2838_s18, 1 }
  0x44   : > { %1219 = vst [vmem:[#allocation4] sm:$0xf] %v2770_v0  ;;  %1549 = vst [vmem:[#allocation5] sm:$0xf] %v2770_v0  ;;  %2236 = vmatprep.mubr.msk.bf16.mxu0 %vm2771_vm0, %v2770_v0  ;;  %2256 = vmatprep.mubr.msk.bf16.mxu1 %vm2771_vm0, %v2770_v0  ;;  %v2536_v4 = vld [vmem:[#allocation6 + $0x30] sm:$0xff]   ;;  %v2537_v5 = vld [vmem:[#allocation6 + $0x68] sm:$0xff]  }
  0x45   : > { %2221 = vmatpush3.bf16.msra.mxu0 %v2533_v1  ;;  %2241 = vmatpush3.bf16.msra.mxu1 %v2534_v2  ;;  %s3154_s18 = smov (!%p433_p2, %s2838_s18), 1  ;;  %v2538_v6 = vld [vmem:[#allocation6 + $0x28] sm:$0xff]   ;;  %v2539_v7 = vld [vmem:[#allocation6 + $0x60] sm:$0xff]   ;;  %v2541_v9 = vld [vmem:[#allocation6 + $0x58] sm:$0xff]  }
  0x46   : > { %2222 = vmatprep.subr.bf16.mxu0 %v2770_v0  ;;  %2242 = vmatprep.subr.bf16.mxu1 %v2770_v0  ;;  %s1990_s19 = sshll.u32 %s3154_s18, 2  ;;  %v2540_v8 = vld [vmem:[#allocation6 + $0x20] sm:$0xff]   ;;  %v2542_v10 = vld [vmem:[#allocation6 + $0x18] sm:$0xff]   ;;  %v2543_v13 = vld [vmem:[#allocation6 + $0x50] sm:$0xff]  }
  0x47   : > { %s2958_s28 = scalar_lea.vmem %s3139_s0, %s1990_s19  ;;  %v2544_v14 = vld [vmem:[#allocation6 + $0x10] sm:$0xff]   ;;  %v2545_v15 = vld [vmem:[#allocation6 + $0x48] sm:$0xff]   ;;  %v2547_v17 = vld [vmem:[#allocation6 + $0x40] sm:$0xff]   ;;  %s440_s29 = scalar_lea.vmem %s3150_s11, %s1990_s19 }
  0x48   : > { %v2963_v11 = vld [vmem:[%s2958_s28] sm:$0xf]  ;;  %v2546_v16 = vld [vmem:[#allocation6 + $0x8] sm:$0xff]   ;;  %v2549_v21 = vld [vmem:[#allocation6 + $0xb8] sm:$0xff]  }
  0x49   : > { %2223 = vmatpush3.bf16.msra.mxu0 %v2535_v3  ;;  %2243 = vmatpush3.bf16.msra.mxu1 %v2536_v4  ;;  %v443_v12 = vunpack.c.l.bf16 %v2963_v11  ;;  %v2548_v18 = vld [vmem:[#allocation6] sm:$0xff]   ;;  %v2550_v24 = vld [vmem:[#allocation6 + $0xb0] sm:$0xff]   ;;  %v2551_v25 = vld [vmem:[#allocation6 + $0xa8] sm:$0xff]  }
  0x4a   : > { %2224 = vmatprep.subr.bf16.mxu0 %v2770_v0  ;;  %2244 = vmatprep.subr.bf16.mxu1 %v2770_v0  ;;  %v2552_v26 = vld [vmem:[#allocation6 + $0xa0] sm:$0xff]   ;;  %v2553_v27 = vld [vmem:[#allocation6 + $0x98] sm:$0xff]   ;;  %v2554_v28 = vld [vmem:[#allocation6 + $0x90] sm:$0xff]  }
  0x4b   : > { %445 = vst [vmem:[#allocation2 + $0x2] sm:$0xff] %v443_v12  ;;  %v2555_v29 = vld [vmem:[#allocation6 + $0x88] sm:$0xff]   ;;  %v2556_v30 = vld [vmem:[#allocation6 + $0x80] sm:$0xff]   ;;  %v2558_v32 = vld [vmem:[#allocation8 + $0x78] sm:$0xff]  }
  0x4c   : > { %v2557_v31 = vld [vmem:[%s2958_s28] ss:$0 sps:$4 sm:$0xff]   ;;  %v2559_v33 = vld [vmem:[#allocation8 + $0x38] sm:$0xff]   ;;  %v2560_v34 = vld [vmem:[#allocation8 + $0x70] sm:$0xff]  }
  0x4d   : > { %2225 = vmatpush3.bf16.msra.mxu0 %v2537_v5  ;;  %2245 = vmatpush3.bf16.msra.mxu1 %v2538_v6  ;;  %v2561_v35 = vld [vmem:[#allocation8 + $0x30] sm:$0xff]   ;;  %v2562_v36 = vld [vmem:[#allocation8 + $0x68] sm:$0xff]   ;;  %v2564_v38 = vld [vmem:[#allocation8 + $0x60] sm:$0xff]  }
  0x4e   : > { %2226 = vmatprep.subr.bf16.mxu0 %v2770_v0  ;;  %2246 = vmatprep.subr.bf16.mxu1 %v2770_v0  ;;  %v2563_v37 = vld [vmem:[#allocation8 + $0x28] sm:$0xff]   ;;  %v2565_v39 = vld [vmem:[#allocation8 + $0x20] sm:$0xff]   ;;  %v2566_v40 = vld [vmem:[#allocation8 + $0x58] sm:$0xff]  }
  0x4f   : > { %v2567_v41 = vld [vmem:[#allocation8 + $0x18] sm:$0xff]   ;;  %v2568_v42 = vld [vmem:[#allocation8 + $0x50] sm:$0xff]   ;;  %v2570_v44 = vld [vmem:[#allocation8 + $0x48] sm:$0xff]  }
  0x50   : > { %v2569_v43 = vld [vmem:[#allocation8 + $0x10] sm:$0xff]   ;;  %v2571_v45 = vld [vmem:[#allocation8 + $0x8] sm:$0xff]   ;;  %v2572_v46 = vld [vmem:[#allocation8 + $0x40] sm:$0xff]  }
  0x51   : > { %2227 = vmatpush3.bf16.msra.mxu0 %v2539_v7  ;;  %2247 = vmatpush3.bf16.msra.mxu1 %v2540_v8  ;;  %v2573_v47 = vld [vmem:[#allocation8] sm:$0xff]   ;;  %v2574_v2 = vld [vmem:[#allocation8 + $0xb8] sm:$0xff]   ;;  %v2576_v8 = vld [vmem:[#allocation8 + $0xb0] sm:$0xff]  }
  0x52   : > { %2228 = vmatprep.subr.bf16.mxu0 %v2770_v0  ;;  %2248 = vmatprep.subr.bf16.mxu1 %v2770_v0  ;;  %v464_v19 = vld [vmem:[#allocation2 + $0x1] sm:$0xff]  ;;  %v2016_v58 = vld [vmem:[%s3141_s2] ss:$0 sm:$0xff]  ;;  %v2575_v5 = vld [vmem:[%s3144_s5 + $0x38] sm:$0xff]  }
  0x53   : > { %v446_v20 = vld [vmem:[#allocation2] sm:$0xff]  ;;  %v465_v22 = vpack.c.bf16 %v464_v19, %v464_v19  ;;  %v2579_v12 = vld [vmem:[%s3144_s5 + $0x28] sm:$0xff]  }
  0x54   : > { %v447_v23 = vpack.c.bf16 %v446_v20, %v446_v20  ;;  %v2586_v19 = vld [vmem:[#allocation8 + $0x88] sm:$0xff]  }
  0x55   : > { %2229 = vmatpush3.bf16.msra.mxu0 %v2541_v9  ;;  %2249 = vmatpush3.bf16.msra.mxu1 %v2542_v10  ;;  %v2577_v9 = vld [vmem:[%s3144_s5 + $0x30] sm:$0xff]   ;;  %v2578_v10 = vld [vmem:[#allocation8 + $0xa8] sm:$0xff]  }
  0x56   : > { %2230 = vmatprep.subr.bf16.mxu0 %v2770_v0  ;;  %2250 = vmatprep.subr.bf16.mxu1 %v2770_v0  ;;  %v2587_v20 = vld [vmem:[%s3144_s5 + $0x8] sm:$0xff]  }
  0x59   : > { %2231 = vmatpush3.bf16.msra.mxu0 %v2543_v13  ;;  %2251 = vmatpush3.bf16.msra.mxu1 %v2544_v14  ;;  %v2580_v13 = vld [vmem:[#allocation8 + $0xa0] sm:$0xff]  }
  0x5a   : > { %2232 = vmatprep.subr.bf16.mxu0 %v2770_v0  ;;  %2252 = vmatprep.subr.bf16.mxu1 %v2770_v0  ;;  %v2581_v14 = vld [vmem:[%s3144_s5 + $0x20] sm:$0xff]  }
  0x5d   : > { %2233 = vmatpush3.bf16.msra.mxu0 %v2545_v15  ;;  %2253 = vmatpush3.bf16.msra.mxu1 %v2546_v16  ;;  %v2582_v15 = vld [vmem:[#allocation8 + $0x98] sm:$0xff]  }
  0x5e   : > { %2234 = vmatprep.subr.bf16.mxu0 %v2770_v0  ;;  %2254 = vmatprep.subr.bf16.mxu1 %v2770_v0  ;;  %v2583_v16 = vld [vmem:[%s3144_s5 + $0x18] sm:$0xff]  }
  0x61   : > { %2235 = vmatpush3.bf16.msra.mxu0 %v2547_v17  ;;  %2255 = vmatpush3.bf16.msra.mxu1 %v2548_v18  ;;  %v2584_v17 = vld [vmem:[#allocation8 + $0x90] sm:$0xff]  }
  0x62   : > { %2260 = vmatprep.subr.bf16.mxu0 %v2770_v0  ;;  %2280 = vmatprep.subr.bf16.mxu1 %v2770_v0  ;;  %v2585_v18 = vld [vmem:[%s3144_s5 + $0x10] sm:$0xff]  }
  0x64   : > { %2237 = vmatmul.mubr.bf16.vlgmr.msra.gmra.mxu0 %v465_v22  ;;  %2257 = vmatmul.mubr.bf16.vlgmr.msra.gmra.mxu1 %v447_v23  ;;  %v2589_v22 = vld [vmem:[%s3144_s5] sm:$0xff]  }
  0x65   : > { %2261 = vmatpush3.bf16.msra.mxu0 %v2549_v21  ;;  %2276 = vmatprep.mubr.msk.bf16.mxu0 %vm2771_vm0, %v2770_v0  ;;  %v2588_v21 = vld [vmem:[#allocation8 + $0x80] sm:$0xff]  }
  0x66   : > { %2262 = vmatprep.subr.bf16.mxu0 %v2770_v0  ;;  %2296 = vmatprep.mubr.msk.bf16.mxu1 %vm2771_vm0, %v2770_v0 }
  0x67   : > { %2281 = vmatpush3.bf16.msra.mxu1 %v2558_v32  ;;  %v2599_v32 = vld [vmem:[#allocation10 + $0x18] sm:$0xff]  }
  0x68   : > { %2282 = vmatprep.subr.bf16.mxu1 %v2770_v0 }
  0x69   : > { %2263 = vmatpush3.bf16.msra.mxu0 %v2550_v24  ;;  %v2590_v24 = vld [vmem:[#allocation10 + $0x78] sm:$0xff]  }
  0x6a   : > { %2264 = vmatprep.subr.bf16.mxu0 %v2770_v0 }
  0x6b   : > { %2283 = vmatpush3.bf16.msra.mxu1 %v2560_v34  ;;  %v2601_v34 = vld [vmem:[#allocation10 + $0x10] sm:$0xff]  }
  0x6c   : > { %2284 = vmatprep.subr.bf16.mxu1 %v2770_v0 }
  0x6d   : > { %2265 = vmatpush3.bf16.msra.mxu0 %v2551_v25  ;;  %v2591_v25 = vld [vmem:[#allocation10 + $0x38] sm:$0xff]  }
  0x6e   : > { %2266 = vmatprep.subr.bf16.mxu0 %v2770_v0 }
  0x6f   : > { %2285 = vmatpush3.bf16.msra.mxu1 %v2562_v36  ;;  %v2603_v36 = vld [vmem:[#allocation10 + $0x8] sm:$0xff]  }
  0x70   : > { %2286 = vmatprep.subr.bf16.mxu1 %v2770_v0 }
  0x71   : > { %2267 = vmatpush3.bf16.msra.mxu0 %v2552_v26  ;;  %v2592_v26 = vld [vmem:[#allocation10 + $0x70] sm:$0xff]  }
  0x72   : > { %2268 = vmatprep.subr.bf16.mxu0 %v2770_v0 }
  0x73   : > { %2287 = vmatpush3.bf16.msra.mxu1 %v2564_v38  ;;  %v2605_v38 = vld [vmem:[#allocation10] sm:$0xff]  }
  0x74   : > { %2288 = vmatprep.subr.bf16.mxu1 %v2770_v0 }
  0x75   : > { %2269 = vmatpush3.bf16.msra.mxu0 %v2553_v27  ;;  %v2593_v27 = vld [vmem:[#allocation10 + $0x30] sm:$0xff]  }
  0x76   : > { %2270 = vmatprep.subr.bf16.mxu0 %v2770_v0 }
  0x77   : > { %2289 = vmatpush3.bf16.msra.mxu1 %v2566_v40 }
  0x78   : > { %2290 = vmatprep.subr.bf16.mxu1 %v2770_v0 }
  0x79   : > { %2271 = vmatpush3.bf16.msra.mxu0 %v2554_v28  ;;  %v2595_v28 = vld [vmem:[#allocation10 + $0x28] sm:$0xff]  }
  0x7a   : > { %2272 = vmatprep.subr.bf16.mxu0 %v2770_v0 }
  0x7b   : > { %2291 = vmatpush3.bf16.msra.mxu1 %v2568_v42 }
  0x7c   : > { %2292 = vmatprep.subr.bf16.mxu1 %v2770_v0 }
  0x7d   : > { %2273 = vmatpush3.bf16.msra.mxu0 %v2555_v29  ;;  %v2596_v29 = vld [vmem:[#allocation10 + $0x60] sm:$0xff]  }
  0x7e   : > { %2274 = vmatprep.subr.bf16.mxu0 %v2770_v0 }
  0x7f   : > { %2293 = vmatpush3.bf16.msra.mxu1 %v2570_v44 }
  0x80   : > { %2294 = vmatprep.subr.bf16.mxu1 %v2770_v0 }
  0x81   : > { %2275 = vmatpush3.bf16.msra.mxu0 %v2556_v30  ;;  %v2597_v30 = vld [vmem:[#allocation10 + $0x20] sm:$0xff]  }
  0x82   : > { %2300 = vmatprep.subr.bf16.mxu0 %v2770_v0 }
  0x83   : > { %2295 = vmatpush3.bf16.msra.mxu1 %v2572_v46 }
  0x84   : > { %2277 = vmatmul.mubr.bf16.vlgmr.msra.gmra.mxu0 %v2557_v31  ;;  %2320 = vmatprep.subr.bf16.mxu1 %v2770_v0  ;;  %v2598_v31 = vld [vmem:[#allocation10 + $0x58] sm:$0xff]  }
  0x85   : > { %2316 = vmatprep.mubr.msk.bf16.mxu0 %vm2771_vm0, %v2770_v0  ;;  %2301 = vmatpush3.bf16.msra.mxu0 %v2559_v33  ;;  %v2600_v33 = vld [vmem:[#allocation10 + $0x50] sm:$0xff]  }
  0x86   : > { %2302 = vmatprep.subr.bf16.mxu0 %v2770_v0 }
  0x89   : > { %2303 = vmatpush3.bf16.msra.mxu0 %v2561_v35  ;;  %v2602_v35 = vld [vmem:[#allocation10 + $0x48] sm:$0xff]  }
  0x8a   : > { %2304 = vmatprep.subr.bf16.mxu0 %v2770_v0 }
  0x8d   : > { %2305 = vmatpush3.bf16.msra.mxu0 %v2563_v37  ;;  %v2604_v37 = vld [vmem:[#allocation10 + $0x40] sm:$0xff]  }
  0x8e   : > { %2306 = vmatprep.subr.bf16.mxu0 %v2770_v0 }
  0x91   : > { %2307 = vmatpush3.bf16.msra.mxu0 %v2565_v39 }
  0x92   : > { %2308 = vmatprep.subr.bf16.mxu0 %v2770_v0 }
  0x95   : > { %2309 = vmatpush3.bf16.msra.mxu0 %v2567_v41 }
  0x96   : > { %2310 = vmatprep.subr.bf16.mxu0 %v2770_v0 }
  0x99   : > { %2311 = vmatpush3.bf16.msra.mxu0 %v2569_v43 }
  0x9a   : > { %2312 = vmatprep.subr.bf16.mxu0 %v2770_v0 }
  0x9d   : > { %2313 = vmatpush3.bf16.msra.mxu0 %v2571_v45 }
  0x9e   : > { %2314 = vmatprep.subr.bf16.mxu0 %v2770_v0 }
  0xa1   : > { %2315 = vmatpush3.bf16.msra.mxu0 %v2573_v47 }
  0xa2   : > { %2340 = vmatprep.subr.bf16.mxu0 %v2770_v0 }
 0x124   : > { %v564_v48 = vpop.f32.mrf.mxu0  ;;  %v652_v49 = vpop.f32.mrf.mxu1 }
 0x125   : > { %v653_v56 = vadd.f32 %v652_v49, %v564_v48  ;;  %v2041_v49 = vld [vmem:[%s3143_s4] ss:$0 sm:$0xff] }
 0x126   : > { %v2238_v50 = vpop.f32.mrf.mxu0  ;;  %v2258_v51 = vpop.f32.mrf.mxu1 }
 0x127   : > { %v2042_v50 = vld [vmem:[%s3145_s6] ss:$0 sm:$0xff] }
 0x128   : > { %v567_v52 = vpop.f32.mrf.mxu0  ;;  %v655_v53 = vpop.f32.mrf.mxu1 }
 0x12a   : > { %v2239_v54 = vpop.f32.mrf.mxu0  ;;  %v2259_v55 = vpop.f32.mrf.mxu1 }
 0x144   : > { %v758_v57 = vpop.f32.mrf.mxu0 }
 0x145   : > { %v764_v59 = vadd.f32 %v758_v57, %v653_v56 }
 0x146   : > { %v2278_v60 = vpop.f32.mrf.mxu0 }
 0x147   : > { %v772_v61 = vadd.f32 %v2016_v58, %v764_v59 }
 0x148   : > { %v761_v62 = vpop.f32.mrf.mxu0 }
 0x149   : > { %v773_v63 = vmax.f32 %v772_v61, 0.0 }
 0x14a   : > { %v2279_v1 = vpop.f32.mrf.mxu0 }
 0x14b   : > { %775 = vst [vmem:[#allocation3 + $0x2] sm:$0xff] %v773_v63  ;;  %v989_v23 = vpack.c.bf16 %v773_v63, %v773_v63 }
 0x152   : > { %v794_v3 = vld [vmem:[#allocation3 + $0x1] sm:$0xff] }
 0x153   : > { %v776_v4 = vld [vmem:[#allocation3] sm:$0xff]  ;;  %v795_v6 = vpack.c.bf16 %v794_v3, %v794_v3 }
 0x154   : > { %v777_v7 = vpack.c.bf16 %v776_v4, %v776_v4 }
 0x155   : > { %2297 = vmatmul.mubr.bf16.vlgmr.msra.gmra.mxu1 %v795_v6 }
 0x156   : > { %2317 = vmatmul.mubr.bf16.vlgmr.msra.gmra.mxu0 %v777_v7  ;;  %2321 = vmatpush3.bf16.msra.mxu1 %v2574_v2 }
 0x157   : > { %2341 = vmatpush3.bf16.msra.mxu0 %v2575_v5  ;;  %2322 = vmatprep.subr.bf16.mxu1 %v2770_v0  ;;  %v2606_v5 = vld [vmem:[#allocation10 + $0xb8] sm:$0xff]  }
 0x158   : > { %2342 = vmatprep.subr.bf16.mxu0 %v2770_v0  ;;  %2336 = vmatprep.mubr.msk.bf16.mxu1 %vm2771_vm0, %v2770_v0 }
 0x159   : > { %2356 = vmatprep.mubr.msk.bf16.mxu0 %vm2771_vm0, %v2770_v0 }
 0x15a   : > { %2323 = vmatpush3.bf16.msra.mxu1 %v2576_v8  ;;  %v2607_v8 = vld [vmem:[#allocation10 + $0xb0] sm:$0xff]  }
 0x15b   : > { %2343 = vmatpush3.bf16.msra.mxu0 %v2577_v9  ;;  %2324 = vmatprep.subr.bf16.mxu1 %v2770_v0  ;;  %v2608_v9 = vld [vmem:[#allocation10 + $0xa8] sm:$0xff]  }
 0x15c   : > { %2344 = vmatprep.subr.bf16.mxu0 %v2770_v0 }
 0x15e   : > { %2325 = vmatpush3.bf16.msra.mxu1 %v2578_v10  ;;  %v2609_v10 = vld [vmem:[#allocation10 + $0xa0] sm:$0xff]  }
 0x15f   : > { %2345 = vmatpush3.bf16.msra.mxu0 %v2579_v12  ;;  %2326 = vmatprep.subr.bf16.mxu1 %v2770_v0  ;;  %v2610_v12 = vld [vmem:[#allocation10 + $0x98] sm:$0xff]  }
 0x160   : > { %2346 = vmatprep.subr.bf16.mxu0 %v2770_v0 }
 0x162   : > { %2327 = vmatpush3.bf16.msra.mxu1 %v2580_v13  ;;  %v2611_v13 = vld [vmem:[#allocation10 + $0x90] sm:$0xff]  }
 0x163   : > { %2347 = vmatpush3.bf16.msra.mxu0 %v2581_v14  ;;  %2328 = vmatprep.subr.bf16.mxu1 %v2770_v0  ;;  %v2612_v14 = vld [vmem:[#allocation10 + $0x88] sm:$0xff]  }
 0x164   : > { %2348 = vmatprep.subr.bf16.mxu0 %v2770_v0 }
 0x166   : > { %2329 = vmatpush3.bf16.msra.mxu1 %v2582_v15  ;;  %v2613_v15 = vld [vmem:[#allocation10 + $0x80] sm:$0xff]  }
 0x167   : > { %2349 = vmatpush3.bf16.msra.mxu0 %v2583_v16  ;;  %2330 = vmatprep.subr.bf16.mxu1 %v2770_v0  ;;  %v2614_v16 = vld [vmem:[#allocation11 + $0x78] sm:$0xff]  }
 0x168   : > { %2350 = vmatprep.subr.bf16.mxu0 %v2770_v0 }
 0x16a   : > { %2331 = vmatpush3.bf16.msra.mxu1 %v2584_v17  ;;  %v2615_v17 = vld [vmem:[#allocation11 + $0x38] sm:$0xff]  }
 0x16b   : > { %2351 = vmatpush3.bf16.msra.mxu0 %v2585_v18  ;;  %2332 = vmatprep.subr.bf16.mxu1 %v2770_v0  ;;  %v2616_v18 = vld [vmem:[#allocation11 + $0x70] sm:$0xff]  }
 0x16c   : > { %2352 = vmatprep.subr.bf16.mxu0 %v2770_v0 }
 0x16e   : > { %2333 = vmatpush3.bf16.msra.mxu1 %v2586_v19  ;;  %v2617_v19 = vld [vmem:[#allocation11 + $0x30] sm:$0xff]  }
 0x16f   : > { %2353 = vmatpush3.bf16.msra.mxu0 %v2587_v20  ;;  %2334 = vmatprep.subr.bf16.mxu1 %v2770_v0  ;;  %v2618_v20 = vld [vmem:[#allocation11 + $0x68] sm:$0xff]  }
 0x170   : > { %2354 = vmatprep.subr.bf16.mxu0 %v2770_v0 }
 0x172   : > { %2335 = vmatpush3.bf16.msra.mxu1 %v2588_v21  ;;  %v2619_v21 = vld [vmem:[#allocation11 + $0x28] sm:$0xff]  }
 0x173   : > { %2355 = vmatpush3.bf16.msra.mxu0 %v2589_v22  ;;  %2360 = vmatprep.subr.bf16.mxu1 %v2770_v0  ;;  %v2620_v22 = vld [vmem:[#allocation11 + $0x60] sm:$0xff]  }
 0x174   : > { %2380 = vmatprep.subr.bf16.mxu0 %v2770_v0 }
 0x175   : > { %2337 = vmatmul.mubr.bf16.vlgmr.msra.gmra.mxu1 %v989_v23  ;;  %v2621_v23 = vld [vmem:[#allocation11 + $0x20] sm:$0xff]  }
 0x176   : > { %2357 = vmatmul.mubr.bf16.vlgmr.msra.gmra.mxu0 %v2963_v11  ;;  %2376 = vmatprep.mubr.msk.bf16.mxu1 %vm2771_vm0, %v2770_v0  ;;  %v2594_v11 = vld [vmem:[#allocation10 + $0x68] sm:$0xff]  }
 0x177   : > { %2396 = vmatprep.mubr.msk.bf16.mxu0 %vm2771_vm0, %v2770_v0  ;;  %2361 = vmatpush3.bf16.msra.mxu1 %v2590_v24  ;;  %v2622_v24 = vld [vmem:[#allocation11 + $0x58] sm:$0xff]  }
 0x178   : > { %2381 = vmatpush3.bf16.msra.mxu0 %v2591_v25  ;;  %2362 = vmatprep.subr.bf16.mxu1 %v2770_v0  ;;  %v2623_v25 = vld [vmem:[#allocation11 + $0x18] sm:$0xff]  }
 0x179   : > { %2382 = vmatprep.subr.bf16.mxu0 %v2770_v0 }
 0x17b   : > { %2363 = vmatpush3.bf16.msra.mxu1 %v2592_v26  ;;  %v2624_v26 = vld [vmem:[#allocation11 + $0x50] sm:$0xff]  }
 0x17c   : > { %2383 = vmatpush3.bf16.msra.mxu0 %v2593_v27  ;;  %2364 = vmatprep.subr.bf16.mxu1 %v2770_v0  ;;  %v2625_v27 = vld [vmem:[#allocation11 + $0x10] sm:$0xff]  }
 0x17d   : > { %2384 = vmatprep.subr.bf16.mxu0 %v2770_v0 }
 0x17f   : > { %2365 = vmatpush3.bf16.msra.mxu1 %v2594_v11  ;;  %v2626_v11 = vld [vmem:[#allocation11 + $0x48] sm:$0xff]  }
 0x180   : > { %2385 = vmatpush3.bf16.msra.mxu0 %v2595_v28  ;;  %2366 = vmatprep.subr.bf16.mxu1 %v2770_v0  ;;  %v2627_v28 = vld [vmem:[#allocation11 + $0x8] sm:$0xff]  }
 0x181   : > { %2386 = vmatprep.subr.bf16.mxu0 %v2770_v0 }
 0x183   : > { %2367 = vmatpush3.bf16.msra.mxu1 %v2596_v29  ;;  %v2628_v29 = vld [vmem:[#allocation11 + $0x40] sm:$0xff]  }
 0x184   : > { %2387 = vmatpush3.bf16.msra.mxu0 %v2597_v30  ;;  %2368 = vmatprep.subr.bf16.mxu1 %v2770_v0  ;;  %v2629_v30 = vld [vmem:[#allocation11] sm:$0xff]  }
 0x185   : > { %2388 = vmatprep.subr.bf16.mxu0 %v2770_v0 }
 0x187   : > { %2369 = vmatpush3.bf16.msra.mxu1 %v2598_v31 }
 0x188   : > { %2389 = vmatpush3.bf16.msra.mxu0 %v2599_v32  ;;  %2370 = vmatprep.subr.bf16.mxu1 %v2770_v0 }
 0x189   : > { %2390 = vmatprep.subr.bf16.mxu0 %v2770_v0 }
 0x18b   : > { %2371 = vmatpush3.bf16.msra.mxu1 %v2600_v33 }
 0x18c   : > { %2391 = vmatpush3.bf16.msra.mxu0 %v2601_v34  ;;  %2372 = vmatprep.subr.bf16.mxu1 %v2770_v0 }
 0x18d   : > { %2392 = vmatprep.subr.bf16.mxu0 %v2770_v0 }
 0x18f   : > { %2373 = vmatpush3.bf16.msra.mxu1 %v2602_v35 }
 0x190   : > { %2393 = vmatpush3.bf16.msra.mxu0 %v2603_v36  ;;  %2374 = vmatprep.subr.bf16.mxu1 %v2770_v0 }
 0x191   : > { %2394 = vmatprep.subr.bf16.mxu0 %v2770_v0 }
 0x193   : > { %2375 = vmatpush3.bf16.msra.mxu1 %v2604_v37 }
 0x194   : > { %2395 = vmatpush3.bf16.msra.mxu0 %v2605_v38  ;;  %2400 = vmatprep.subr.bf16.mxu1 %v2770_v0 }
 0x195   : > { %2420 = vmatprep.subr.bf16.mxu0 %v2770_v0 }
 0x215   : > { %v894_v39 = vpop.f32.mrf.mxu1 }
 0x216   : > { %v982_v40 = vpop.f32.mrf.mxu0 }
 0x217   : > { %v2298_v41 = vpop.f32.mrf.mxu1  ;;  %v983_v47 = vadd.f32 %v982_v40, %v894_v39 }
 0x218   : > { %v2318_v42 = vpop.f32.mrf.mxu0  ;;  %v2075_v41 = vld [vmem:[%s3147_s8] ss:$0 sm:$0xff] }
 0x219   : > { %v897_v43 = vpop.f32.mrf.mxu1 }
 0x21a   : > { %v985_v44 = vpop.f32.mrf.mxu0 }
 0x21b   : > { %v2299_v45 = vpop.f32.mrf.mxu1 }
 0x21c   : > { %v2319_v46 = vpop.f32.mrf.mxu0 }
 0x235   : > { %v1088_v48 = vpop.f32.mrf.mxu1 }
 0x236   : > { %v1209_v51 = vpop.f32.mrf.mxu0  ;;  %v1094_v52 = vadd.f32 %v1088_v48, %v983_v47 }
 0x237   : > { %v2338_v53 = vpop.f32.mrf.mxu1  ;;  %v1210_v56 = vadd.f32 %v2042_v50, %v1209_v51  ;;  %v2630_v50 = vld [vmem:[#allocation11 + $0xb8] sm:$0xff]  }
 0x238   : > { %v2358_v54 = vpop.f32.mrf.mxu0  ;;  %v1102_v55 = vadd.f32 %v2041_v49, %v1094_v52  ;;  %v2631_v53 = vld [vmem:[#allocation11 + $0xb0] sm:$0xff]  }
 0x239   : > { %v1091_v57 = vpop.f32.mrf.mxu1  ;;  %v2632_v54 = vld [vmem:[#allocation11 + $0xa8] sm:$0xff]  }
 0x23a   : > { %v1212_v58 = vpop.f32.mrf.mxu0  ;;  %v1103_v59 = vmax.f32 %v1102_v55, 0.0  ;;  %v2633_v55 = vld [vmem:[#allocation11 + $0xa0] sm:$0xff]   ;;  %v2635_v57 = vld [vmem:[#allocation11 + $0x90] sm:$0xff]  }
 0x23b   : > { %v2339_v60 = vpop.f32.mrf.mxu1  ;;  %v2636_v58 = vld [vmem:[#allocation11 + $0x88] sm:$0xff]  }
 0x23c   : > { %v2359_v61 = vpop.f32.mrf.mxu0  ;;  %v1215_v62 = vadd.f32 %v1210_v56, %v1103_v59  ;;  %v2634_v56 = vld [vmem:[#allocation11 + $0x98] sm:$0xff]   ;;  %v2637_v59 = vld [vmem:[#allocation11 + $0x80] sm:$0xff]  }
 0x23e   : > { %v1216_v63 = vmax.f32 %v1215_v62, 0.0 }
 0x240   : > { %v3079_v1 = vpack.c.bf16 %v1216_v63, %v1216_v63 }
 0x242   : > { %v1218_v2 = vunpack.c.l.bf16 %v3079_v1 }
 0x244   : > { %1220 = vst [vmem:[#allocation4 + $0x4] sm:$0xff] %v1218_v2 }
 0x24b   : > { %v1239_v3 = vld [vmem:[#allocation4 + $0x2] sm:$0xff] }
 0x24c   : > { %v1221_v4 = vld [vmem:[#allocation4] sm:$0xff]  ;;  %v1240_v6 = vpack.c.bf16 %v1239_v3, %v1239_v3 }
 0x24d   : > { %v1222_v7 = vpack.c.bf16 %v1221_v4, %v1221_v4 }
 0x24e   : > { %2377 = vmatmul.mubr.bf16.vlgmr.msra.gmra.mxu1 %v1240_v6 }
 0x24f   : > { %2397 = vmatmul.mubr.bf16.vlgmr.msra.gmra.mxu0 %v1222_v7  ;;  %2401 = vmatpush3.bf16.msra.mxu1 %v2606_v5 }
 0x250   : > { %2416 = vmatprep.mubr.msk.bf16.mxu1 %vm2771_vm0, %v2770_v0  ;;  %2402 = vmatprep.subr.bf16.mxu1 %v2770_v0 }
 0x251   : > { %2436 = vmatprep.mubr.msk.bf16.mxu0 %vm2771_vm0, %v2770_v0  ;;  %2421 = vmatpush3.bf16.msra.mxu0 %v2614_v16 }
 0x252   : > { %2422 = vmatprep.subr.bf16.mxu0 %v2770_v0 }
 0x253   : > { %2403 = vmatpush3.bf16.msra.mxu1 %v2607_v8 }
 0x254   : > { %2404 = vmatprep.subr.bf16.mxu1 %v2770_v0 }
 0x255   : > { %2423 = vmatpush3.bf16.msra.mxu0 %v2616_v18 }
 0x256   : > { %2424 = vmatprep.subr.bf16.mxu0 %v2770_v0 }
 0x257   : > { %2405 = vmatpush3.bf16.msra.mxu1 %v2608_v9 }
 0x258   : > { %2406 = vmatprep.subr.bf16.mxu1 %v2770_v0 }
 0x259   : > { %2425 = vmatpush3.bf16.msra.mxu0 %v2618_v20 }
 0x25a   : > { %2426 = vmatprep.subr.bf16.mxu0 %v2770_v0 }
 0x25b   : > { %2407 = vmatpush3.bf16.msra.mxu1 %v2609_v10  ;;  %v2100_v10 = vld [vmem:[%s3149_s10] ss:$0 sm:$0xff] }
 0x25c   : > { %2408 = vmatprep.subr.bf16.mxu1 %v2770_v0 }
 0x25d   : > { %2427 = vmatpush3.bf16.msra.mxu0 %v2620_v22 }
 0x25e   : > { %2428 = vmatprep.subr.bf16.mxu0 %v2770_v0 }
 0x25f   : > { %2409 = vmatpush3.bf16.msra.mxu1 %v2610_v12 }
 0x260   : > { %2410 = vmatprep.subr.bf16.mxu1 %v2770_v0 }
 0x261   : > { %2429 = vmatpush3.bf16.msra.mxu0 %v2622_v24 }
 0x262   : > { %2430 = vmatprep.subr.bf16.mxu0 %v2770_v0 }
 0x263   : > { %2411 = vmatpush3.bf16.msra.mxu1 %v2611_v13 }
 0x264   : > { %2412 = vmatprep.subr.bf16.mxu1 %v2770_v0 }
 0x265   : > { %2431 = vmatpush3.bf16.msra.mxu0 %v2624_v26 }
 0x266   : > { %2432 = vmatprep.subr.bf16.mxu0 %v2770_v0 }
 0x267   : > { %2413 = vmatpush3.bf16.msra.mxu1 %v2612_v14 }
 0x268   : > { %2414 = vmatprep.subr.bf16.mxu1 %v2770_v0 }
 0x269   : > { %2433 = vmatpush3.bf16.msra.mxu0 %v2626_v11 }
 0x26a   : > { %2434 = vmatprep.subr.bf16.mxu0 %v2770_v0 }
 0x26b   : > { %2415 = vmatpush3.bf16.msra.mxu1 %v2613_v15 }
 0x26c   : > { %2440 = vmatprep.subr.bf16.mxu1 %v2770_v0 }
 0x26d   : > { %2435 = vmatpush3.bf16.msra.mxu0 %v2628_v29 }
 0x26e   : > { %2417 = vmatmul.mubr.bf16.vlgmr.msra.gmra.mxu1 %v3079_v1  ;;  %2460 = vmatprep.subr.bf16.mxu0 %v2770_v0 }
 0x26f   : > { %2456 = vmatprep.mubr.msk.bf16.mxu1 %vm2771_vm0, %v2770_v0  ;;  %2441 = vmatpush3.bf16.msra.mxu1 %v2615_v17 }
 0x270   : > { %2442 = vmatprep.subr.bf16.mxu1 %v2770_v0 }
 0x273   : > { %2443 = vmatpush3.bf16.msra.mxu1 %v2617_v19 }
 0x274   : > { %2444 = vmatprep.subr.bf16.mxu1 %v2770_v0 }
 0x277   : > { %2445 = vmatpush3.bf16.msra.mxu1 %v2619_v21 }
 0x278   : > { %2446 = vmatprep.subr.bf16.mxu1 %v2770_v0 }
 0x27b   : > { %2447 = vmatpush3.bf16.msra.mxu1 %v2621_v23 }
 0x27c   : > { %2448 = vmatprep.subr.bf16.mxu1 %v2770_v0 }
 0x27f   : > { %2449 = vmatpush3.bf16.msra.mxu1 %v2623_v25 }
 0x280   : > { %2450 = vmatprep.subr.bf16.mxu1 %v2770_v0 }
 0x283   : > { %2451 = vmatpush3.bf16.msra.mxu1 %v2625_v27 }
 0x284   : > { %2452 = vmatprep.subr.bf16.mxu1 %v2770_v0 }
 0x287   : > { %2453 = vmatpush3.bf16.msra.mxu1 %v2627_v28 }
 0x288   : > { %2454 = vmatprep.subr.bf16.mxu1 %v2770_v0 }
 0x28b   : > { %2455 = vmatpush3.bf16.msra.mxu1 %v2629_v30 }
 0x30e   : > { %v1339_v31 = vpop.f32.mrf.mxu1 }
 0x30f   : > { %v1427_v32 = vpop.f32.mrf.mxu0 }
 0x310   : > { %v2378_v33 = vpop.f32.mrf.mxu1  ;;  %v1428_v39 = vadd.f32 %v1427_v32, %v1339_v31 }
 0x311   : > { %v2398_v34 = vpop.f32.mrf.mxu0 }
 0x312   : > { %v1342_v35 = vpop.f32.mrf.mxu1 }
 0x313   : > { %v1430_v36 = vpop.f32.mrf.mxu0 }
 0x314   : > { %v2379_v37 = vpop.f32.mrf.mxu1 }
 0x315   : > { %v2399_v38 = vpop.f32.mrf.mxu0 }
 0x32e   : > { %v1533_v40 = vpop.f32.mrf.mxu1 }
 0x32f   : > { %v1539_v42 = vadd.f32 %v1533_v40, %v1428_v39 }
 0x330   : > { %v2418_v43 = vpop.f32.mrf.mxu1 }
 0x331   : > { %v1547_v44 = vadd.f32 %v2075_v41, %v1539_v42 }
 0x332   : > { %v1536_v45 = vpop.f32.mrf.mxu1 }
 0x333   : > { %v1548_v46 = vmax.f32 %v1547_v44, 0.0 }
 0x334   : > { %v2419_v47 = vpop.f32.mrf.mxu1 }
 0x335   : > { %1550 = vst [vmem:[#allocation5 + $0x4] sm:$0xff] %v1548_v46  ;;  %v1764_v60 = vpack.c.bf16 %v1548_v46, %v1548_v46 }
 0x33c   : > { %v1569_v48 = vld [vmem:[#allocation5 + $0x2] sm:$0xff] }
 0x33d   : > { %v1551_v49 = vld [vmem:[#allocation5] sm:$0xff]  ;;  %v1570_v51 = vpack.c.bf16 %v1569_v48, %v1569_v48 }
 0x33e   : > { %v1552_v52 = vpack.c.bf16 %v1551_v49, %v1551_v49 }
 0x33f   : > { %2437 = vmatmul.mubr.bf16.vlgmr.msra.gmra.mxu0 %v1570_v51 }
 0x340   : > { %2457 = vmatmul.mubr.bf16.vlgmr.msra.gmra.mxu1 %v1552_v52  ;;  %2461 = vmatpush3.bf16.msra.mxu0 %v2630_v50 }
 0x341   : > { %2476 = vmatprep.mubr.msk.bf16.mxu0 %vm2771_vm0, %v2770_v0  ;;  %2462 = vmatprep.subr.bf16.mxu0 %v2770_v0 }
 0x344   : > { %2463 = vmatpush3.bf16.msra.mxu0 %v2631_v53 }
 0x345   : > { %2464 = vmatprep.subr.bf16.mxu0 %v2770_v0 }
 0x348   : > { %2465 = vmatpush3.bf16.msra.mxu0 %v2632_v54 }
 0x349   : > { %2466 = vmatprep.subr.bf16.mxu0 %v2770_v0 }
 0x34c   : > { %2467 = vmatpush3.bf16.msra.mxu0 %v2633_v55 }
 0x34d   : > { %2468 = vmatprep.subr.bf16.mxu0 %v2770_v0 }
 0x350   : > { %2469 = vmatpush3.bf16.msra.mxu0 %v2634_v56 }
 0x351   : > { %2470 = vmatprep.subr.bf16.mxu0 %v2770_v0 }
 0x354   : > { %2471 = vmatpush3.bf16.msra.mxu0 %v2635_v57 }
 0x355   : > { %2472 = vmatprep.subr.bf16.mxu0 %v2770_v0 }
 0x358   : > { %2473 = vmatpush3.bf16.msra.mxu0 %v2636_v58 }
 0x359   : > { %2474 = vmatprep.subr.bf16.mxu0 %v2770_v0 }
 0x35c   : > { %2475 = vmatpush3.bf16.msra.mxu0 %v2637_v59 }
 0x35f   : > { %2477 = vmatmul.mubr.bf16.vlgmr.msra.gmra.mxu0 %v1764_v60 }
 0x3ff   : > { %v1669_v61 = vpop.f32.mrf.mxu0 }
 0x400   : > { %v1757_v62 = vpop.f32.mrf.mxu1 }
 0x401   : > { %v2438_v63 = vpop.f32.mrf.mxu0  ;;  %v1758_v8 = vadd.f32 %v1757_v62, %v1669_v61 }
 0x402   : > { %v2458_v3 = vpop.f32.mrf.mxu1 }
 0x403   : > { %v1672_v4 = vpop.f32.mrf.mxu0 }
 0x404   : > { %v1760_v5 = vpop.f32.mrf.mxu1 }
 0x405   : > { %v2439_v6 = vpop.f32.mrf.mxu0 }
 0x406   : > { %v2459_v7 = vpop.f32.mrf.mxu1 }
 0x41f   : > { %v1863_v9 = vpop.f32.mrf.mxu0 }
 0x420   : > { %v1869_v12 = vadd.f32 %v1863_v9, %v1758_v8 }
 0x421   : > { %v2478_v0 = vpop.f32.mrf.mxu0 }
 0x422   : > { %v1877_v13 = vadd.f32 %v2100_v10, %v1869_v12 }
 0x423   : > { %v1866_v14 = vpop.f32.mrf.mxu0 }
 0x424   : > { %v1878_v15 = vmax.f32 %v1877_v13, 0.0 }
 0x425   : > { %v2479_v16 = vpop.f32.mrf.mxu0 }
 0x426   : > { %v1879_v17 = vadd.f32 %v1878_v15, %v1218_v2 }
 0x428   : > { %v1880_v18 = vmax.f32 %v1879_v17, 0.0 }
 0x42a   : > { %v1881_v19 = vpack.c.bf16 %v1880_v18, %v1880_v18 }
 0x42c   : > { %1882 = vst [vmem:[%s440_s29] sm:$0xf] %v1881_v19 }
 0x42d PF: > { %s24_s17 = sadd.s32 1, %s2762_s17  }
 0x42e   : > { %p21_p3 = scmp.ge.s32.totalorder %s24_s17, 4  }
 0x430   :  { %23 = sbr.rel (!%p21_p3) target bundleno = 3 (0x3), region = 111 }
 0x435   :  { %1902 = vsyncpa [#allocation7], 1 }
 0x436   :  { %1904 = vsyncpa [#allocation7 + $0x1], 1 }
 0x437   :  { %1905 = vsyncpa [#allocation9], 1 }
 0x438   :  { %1906 = vsyncpa [#allocation12], 1 }

</bundles_post_ra>
